<compile_context>
chip_gen: v5e
topology: v5e:2x2
jax: 0.10.0
libtpu: 0.0.40
codegen_flags: <defaults>
</compile_context>

<pallas_src>
import jax
import jax.numpy as jnp
from jax.experimental import pallas as pl
from jax.experimental.pallas import tpu as pltpu


K7 = 7          # gate conv kernel size
PAD = 3         # (K7 - 1) // 2


# ----------------------------------------------------------------------------
# Fused TripletAttention_Conv forward kernel factory
# ----------------------------------------------------------------------------
def make_triplet_attention(N, C1, C2, H, W, compute_dtype=jnp.bfloat16):
    HW = H * W
    assert H & (H - 1) == 0, "in-kernel tree pooling over H needs power-of-two H"

    def kernel(x_ref, mcw_ref, mhc_ref, wconv_ref, whw1_ref, bias_ref, par_ref, out_ref):
        f32 = jnp.float32

        def silu(v):
            # v * sigmoid(v); sigmoid lowers to the EUP logistic.
            # TODO(synk): swap in pl.reciprocal(1+exp(-v), approx=True) for production if the
            #             extra ~1e-3 relative error is acceptable downstream.
            return v * jax.nn.sigmoid(v)

        x_lo = x_ref[0]                     # (C1, HW) bf16 - feeds the MXU directly
        x = x_lo.astype(f32)                # f32 for all VPU/EUP math (v5e-safe)

        # ---- ZPool over H: tree-halving reduce on the h-major lane axis -> (C1, W) ----
        mx, sm, size = x, x, HW
        while size > W:
            half = size // 2
            mx = jnp.maximum(mx[:, :half], mx[:, half:size])
            sm = sm[:, :half] + sm[:, half:size]
            size = half
        zmax_h, zmean_h = mx, sm * (1.0 / H)

        # ---- ZPool over W: per-row lane reduces -> (C1, H) ----
        # TODO(synk): at production H this becomes the per-tile reduction of the HW-tiled pass.
        mw, sw = [], []
        for h in range(H):
            chunk = x[:, h * W:(h + 1) * W]
            mw.append(jnp.max(chunk, axis=1, keepdims=True))
            sw.append(jnp.sum(chunk, axis=1, keepdims=True))
        zmax_w = jnp.concatenate(mw, axis=1)
        zmean_w = jnp.concatenate(sw, axis=1) * (1.0 / W)

        # ---- 7x7 gate conv(2->1)+BN (folded) lowered to ONE banded MXU dot per gate ----
        def gate(zmax, zmean, mb_ref, bias):
            B = zmax.shape[1]
            zc = jnp.concatenate([zmax, zmean], axis=1)                          # (C1, 2B)
            zp = jnp.concatenate(
                [jnp.zeros((PAD, 2 * B), f32), zc, jnp.zeros((PAD, 2 * B), f32)], axis=0)
            # 7 channel-shifted slices concatenated along the contraction axis -> one dot.
            lhs = jnp.concatenate([zp[d:d + C1, :] for d in range(K7)], axis=1)  # (C1, 14B)
            acc = jnp.dot(lhs.astype(compute_dtype), mb_ref[...],
                          preferred_element_type=f32)                            # (C1, B)
            y = acc + bias
            return jax.nn.sigmoid(silu(y))   # BasicConv(relu=False) -> SiLU, then sigmoid gate

        scale_cw = gate(zmax_h, zmean_h, mcw_ref, par_ref[0])     # (C1, W)
        scale_hc = gate(zmax_w, zmean_w, mhc_ref, par_ref[1])     # (C1, H)

        # ---- hw gate: ZPool over C, 1x1 conv(2->1)+BN, SiLU, sigmoid ----
        zc_max = jnp.max(x, axis=0, keepdims=True)
        zc_mean = jnp.sum(x, axis=0, keepdims=True) * (1.0 / C1)
        scale_hw = jax.nn.sigmoid(
            silu(par_ref[2] * zc_max + par_ref[3] * zc_mean + par_ref[4]))       # (1, HW)

        # ---- apply the gate scales directly (no (W,HW)/(H,HW) broadcast matmuls) ----
        sc_cw = jnp.concatenate([scale_cw] * H, axis=1)             # (C1, HW) tiled over h
        xg_cw = (x * sc_cw).astype(compute_dtype)
        xg_hc = jnp.concatenate(
            [x[:, h * W:(h + 1) * W] * scale_hc[:, h:h + 1] for h in range(H)],
            axis=1).astype(compute_dtype)                           # (C1, HW)

        # ---- shared Conv(c1->c2,1)+BN+SiLU heads: bias as (C2,1) add, no ones-row/concat ----
        wc = wconv_ref[...]
        b_conv = bias_ref[:, 0:1]
        b_hw1 = bias_ref[:, 1:2]
        y1 = silu(jnp.dot(wc, xg_cw, preferred_element_type=f32) + b_conv)       # (C2, HW)
        y2 = silu(jnp.dot(wc, xg_hc, preferred_element_type=f32) + b_conv)       # (C2, HW)
        xh = silu(jnp.dot(whw1_ref[...], x_lo, preferred_element_type=f32) + b_hw1)

        out_ref[0] = (xh * scale_hw + y1 + y2) * (1.0 / 3.0)

    esize = jnp.dtype(compute_dtype).itemsize
    cost = pl.CostEstimate(
        flops=N * (2 * (3 * C2 * C1 * HW + C1 * 14 * W * W + C1 * 14 * H * H)
                   + 24 * C1 * HW + 12 * C2 * HW),
        transcendentals=N * (3 * C2 * HW + 2 * HW + 2 * C1 * (H + W)),
        bytes_accessed=(N * C1 * HW * esize + N * C2 * HW * 4
                        + (14 * W * W + 14 * H * H + 2 * C2 * C1) * esize
                        + (2 * C2 + 5) * 4),
    )

    return pl.pallas_call(
        kernel,
        out_shape=jax.ShapeDtypeStruct((N, C2, HW), jnp.float32),
        grid=(N,),
        in_specs=[
            pl.BlockSpec((1, C1, HW), lambda n: (n, 0, 0)),          # x, lane-dense, bf16
            pl.BlockSpec((2 * K7 * W, W), lambda n: (0, 0)),         # cw banded stack (bf16)
            pl.BlockSpec((2 * K7 * H, H), lambda n: (0, 0)),         # hc banded stack (bf16)
            pl.BlockSpec((C2, C1), lambda n: (0, 0)),                # shared 1x1 conv (bf16)
            pl.BlockSpec((C2, C1), lambda n: (0, 0)),                # hw conv1 (bf16)
            pl.BlockSpec((C2, 2), lambda n: (0, 0)),                 # folded BN biases (f32)
            pl.BlockSpec(memory_space=pltpu.MemorySpace.SMEM),       # 5 folded scalars
        ],
        out_specs=pl.BlockSpec((1, C2, HW), lambda n: (n, 0, 0)),
        compiler_params=pltpu.CompilerParams(
            dimension_semantics=("parallel",),
            vmem_limit_bytes=64 * 1024 * 1024),
        cost_estimate=cost,
    )


def triplet_attention_conv(x, mcw, mhc, w_conv, w_hw1, biases, params):
    """x: (N, C1, H, W) -> (N, C2, H, W).  Only a metadata reshape + bf16 cast on the wrapper."""
    N, C1, H, W = x.shape
    C2 = w_conv.shape[0]
    fwd = make_triplet_attention(N, C1, C2, H, W, compute_dtype=w_conv.dtype)
    x2 = x.reshape(N, C1, H * W).astype(w_conv.dtype)
    out = fwd(x2, mcw, mhc, w_conv, w_hw1, biases, params)
    return out.reshape(N, C2, H, W)


# ----------------------------------------------------------------------------
# Host-side parameter helpers (BN folded in inference mode)
# ----------------------------------------------------------------------------
def bn_params(key, c):
    k1, k2, k3, k4 = jax.random.split(key, 4)
    gamma = 1.0 + 0.1 * jax.random.normal(k1, (c,), jnp.float32)
    beta = 0.1 * jax.random.normal(k2, (c,), jnp.float32)
    mean = 0.1 * jax.random.normal(k3, (c,), jnp.float32)
    var = 1.0 + 0.1 * jax.random.uniform(k4, (c,), jnp.float32)
    return gamma, beta, mean, var


def fold_bn(w, gamma, beta, mean, var, eps=1e-5):
    # w: (out, ...) bias-free conv weight. Returns (scaled_w, bias).
    s = gamma / jnp.sqrt(var + eps)
    w_f = w * s.reshape((-1,) + (1,) * (w.ndim - 1))
    b_f = beta - mean * s
    return w_f, b_f


def banded_stack(taps_fn, B, dtype):
    # (14*B, B) stack of banded matrices, row order = (channel-shift d outer, ZPool plane k inner)
    # matching the in-kernel LHS concat; block[d,k][j, b] = taps_fn(k, d)[j - b + 3] for |j-b|<=3.
    jj = jnp.arange(B)[:, None]
    bb = jnp.arange(B)[None, :]
    d = jj - bb + PAD
    valid = (d >= 0) & (d < K7)
    dc = jnp.clip(d, 0, K7 - 1)
    blocks = []
    for dd in range(K7):
        for k in range(2):
            taps = taps_fn(k, dd)                          # (7,)
            blocks.append(jnp.where(valid, taps[dc], 0.0))
    return jnp.concatenate(blocks, axis=0).astype(dtype)   # (14*B, B)


def silu(v):
    return v * jax.nn.sigmoid(v)


if __name__ == "__main__":
    N, C1, C2, H, W = 2, 4, 8, 16, 16
    key = jax.random.PRNGKey(0)
    ks = jax.random.split(key, 12)

    x = jax.random.normal(ks[0], (N, C1, H, W), jnp.float32)
    # The kernel streams x in bf16; validate on the bf16-representable input.
    x = x.astype(jnp.bfloat16).astype(jnp.float32)

    # cw gate (AttentionGate2): 7x7 conv (1,2,7,7) bias=False + BN(1)
    w_cw = 0.1 * jax.random.normal(ks[1], (1, 2, 7, 7), jnp.float32)
    w_cw_f, b_cw_f = fold_bn(w_cw, *bn_params(ks[2], 1))
    # hc gate (AttentionGate2)
    w_hc = 0.1 * jax.random.normal(ks[3], (1, 2, 7, 7), jnp.float32)
    w_hc_f, b_hc_f = fold_bn(w_hc, *bn_params(ks[4], 1))
    # shared Conv(c1->c2, k=1) + BN(c2) + SiLU
    w_conv = 0.1 * jax.random.normal(ks[5], (C2, C1), jnp.float32)
    w_conv_f, b_conv_f = fold_bn(w_conv, *bn_params(ks[6], C2))
    # hw AttentionGate: conv1 = Conv(c1->c2,1)+BN+SiLU, conv2 = Conv(2->1,1)+BN+SiLU
    w_hw1 = 0.1 * jax.random.normal(ks[7], (C2, C1), jnp.float32)
    w_hw1_f, b_hw1_f = fold_bn(w_hw1, *bn_params(ks[8], C2))
    w_hw2 = 0.1 * jax.random.normal(ks[9], (1, 2), jnp.float32)
    w_hw2_f, b_hw2_f = fold_bn(w_hw2, *bn_params(ks[10], 1))

    cdt = jnp.bfloat16
    # Banded stacks lowering the 7x7 gate convs onto the MXU (one dot per gate).
    mcw = banded_stack(lambda k, d: w_cw_f[0, k, d, :], W, cdt)     # cw plane (C1, W)
    mhc = banded_stack(lambda k, d: w_hc_f[0, k, :, d], H, cdt)     # hc plane (C1, H)
    biases = jnp.stack([b_conv_f, b_hw1_f], axis=1).astype(jnp.float32)   # (C2, 2)
    params = jnp.array([b_cw_f[0], b_hc_f[0],
                        w_hw2_f[0, 0], w_hw2_f[0, 1], b_hw2_f[0]], jnp.float32)

    out = triplet_attention_conv(x, mcw, mhc,
                                 w_conv_f.astype(cdt), w_hw1_f.astype(cdt),
                                 biases, params)
    jax.block_until_ready(out)

    # ---------------- pure-JAX f32 reference (mirrors the PyTorch module) ----------------
    def ag2_ref(xp, w, bias):
        # xp: (N, D, A, B); ZPool over axis 1, 7x7 conv(2->1)+BN (folded) + SiLU, sigmoid gate
        zmax = xp.max(axis=1)
        zmean = xp.mean(axis=1)
        z = jnp.stack([zmax, zmean], axis=1)              # (N, 2, A, B)
        zp = jnp.pad(z, ((0, 0), (0, 0), (3, 3), (3, 3)))
        A, B = xp.shape[2], xp.shape[3]
        acc = jnp.zeros((xp.shape[0], A, B), jnp.float32)
        for k in range(2):
            for i in range(7):
                for j in range(7):
                    acc = acc + w[k, i, j] * zp[:, k, i:i + A, j:j + B]
        return xp * jax.nn.sigmoid(silu(acc + bias))[:, None]

    def ref_forward(xv):
        o1 = jnp.transpose(ag2_ref(jnp.transpose(xv, (0, 2, 1, 3)), w_cw_f[0], b_cw_f[0]),
                           (0, 2, 1, 3))
        o2 = jnp.transpose(ag2_ref(jnp.transpose(xv, (0, 3, 2, 1)), w_hc_f[0], b_hc_f[0]),
                           (0, 3, 2, 1))
        x11 = silu(jnp.einsum('oc,nchw->nohw', w_conv_f, o1) + b_conv_f[None, :, None, None])
        x21 = silu(jnp.einsum('oc,nchw->nohw', w_conv_f, o2) + b_conv_f[None, :, None, None])
        zmax = xv.max(axis=1)
        zmean = xv.mean(axis=1)
        s = w_hw2_f[0, 0] * zmax + w_hw2_f[0, 1] * zmean + b_hw2_f[0]
        scale = jax.nn.sigmoid(silu(s))[:, None]
        xh = silu(jnp.einsum('oc,nchw->nohw', w_hw1_f, xv) + b_hw1_f[None, :, None, None])
        return (xh * scale + x11 + x21) / 3.0

    ref = ref_forward(x)
    err = float(jnp.max(jnp.abs(out - ref)))
    # bf16 MXU operands / bf16-stored weights vs f32 reference -> loosened tolerance.
    assert jnp.allclose(out, ref, atol=1e-2, rtol=1e-2), f"max abs err {err}"
    print("KERNEL_OK")
</pallas_src>

<mosaic_0001>
module attributes {stable_mosaic.version = 11 : i64} {
  func.func @kernel(%arg0: i32, %arg1: memref<1x4x256xbf16, #tpu.memory_space<vmem>>, %arg2: memref<224x16xbf16, #tpu.memory_space<vmem>>, %arg3: memref<224x16xbf16, #tpu.memory_space<vmem>>, %arg4: memref<8x4xbf16, #tpu.memory_space<vmem>>, %arg5: memref<8x4xbf16, #tpu.memory_space<vmem>>, %arg6: memref<8x2xf32, #tpu.memory_space<vmem>>, %arg7: memref<5xf32, #tpu.memory_space<smem>>, %arg8: memref<1x8x256xf32, #tpu.memory_space<vmem>>) attributes {dimension_semantics = [#tpu.dimension_semantics<parallel>], iteration_bounds = array<i64: 2>, scalar_prefetch = 0 : i64, scratch_operands = 0 : i64, tpu.core_type = #tpu.core_type<tc>, window_params = [{transform_indices = @transform_0, window_bounds = array<i64: 1, 4, 256>}, {pipeline_mode = #tpu.pipeline_mode<synchronous>, transform_indices = @transform_1, window_bounds = array<i64: 224, 16>}, {pipeline_mode = #tpu.pipeline_mode<synchronous>, transform_indices = @transform_2, window_bounds = array<i64: 224, 16>}, {pipeline_mode = #tpu.pipeline_mode<synchronous>, transform_indices = @transform_3, window_bounds = array<i64: 8, 4>}, {pipeline_mode = #tpu.pipeline_mode<synchronous>, transform_indices = @transform_4, window_bounds = array<i64: 8, 4>}, {pipeline_mode = #tpu.pipeline_mode<synchronous>, transform_indices = @transform_5, window_bounds = array<i64: 8, 2>}, {transform_indices = @transform_6, window_bounds = array<i64: 5>}, {transform_indices = @transform_7, window_bounds = array<i64: 1, 8, 256>}]} {
    %c0 = arith.constant 0 : index
    %c0_0 = arith.constant 0 : index
    %c0_1 = arith.constant 0 : index
    %0 = vector.load %arg1[%c0, %c0_0, %c0_1] : memref<1x4x256xbf16, #tpu.memory_space<vmem>>, vector<1x4x256xbf16>
    %1 = vector.shape_cast %0 : vector<1x4x256xbf16> to vector<4x256xbf16>
    %2 = arith.extf %1 : vector<4x256xbf16> to vector<4x256xf32>
    %3 = vector.extract_strided_slice %2 {offsets = [0, 0], sizes = [4, 128], strides = [1, 1]} : vector<4x256xf32> to vector<4x128xf32>
    %4 = vector.extract_strided_slice %2 {offsets = [0, 128], sizes = [4, 128], strides = [1, 1]} : vector<4x256xf32> to vector<4x128xf32>
    %5 = arith.maximumf %3, %4 : vector<4x128xf32>
    %6 = vector.extract_strided_slice %2 {offsets = [0, 0], sizes = [4, 128], strides = [1, 1]} : vector<4x256xf32> to vector<4x128xf32>
    %7 = vector.extract_strided_slice %2 {offsets = [0, 128], sizes = [4, 128], strides = [1, 1]} : vector<4x256xf32> to vector<4x128xf32>
    %8 = arith.addf %6, %7 : vector<4x128xf32>
    %9 = vector.extract_strided_slice %5 {offsets = [0, 0], sizes = [4, 64], strides = [1, 1]} : vector<4x128xf32> to vector<4x64xf32>
    %10 = vector.extract_strided_slice %5 {offsets = [0, 64], sizes = [4, 64], strides = [1, 1]} : vector<4x128xf32> to vector<4x64xf32>
    %11 = arith.maximumf %9, %10 : vector<4x64xf32>
    %12 = vector.extract_strided_slice %8 {offsets = [0, 0], sizes = [4, 64], strides = [1, 1]} : vector<4x128xf32> to vector<4x64xf32>
    %13 = vector.extract_strided_slice %8 {offsets = [0, 64], sizes = [4, 64], strides = [1, 1]} : vector<4x128xf32> to vector<4x64xf32>
    %14 = arith.addf %12, %13 : vector<4x64xf32>
    %15 = vector.extract_strided_slice %11 {offsets = [0, 0], sizes = [4, 32], strides = [1, 1]} : vector<4x64xf32> to vector<4x32xf32>
    %16 = vector.extract_strided_slice %11 {offsets = [0, 32], sizes = [4, 32], strides = [1, 1]} : vector<4x64xf32> to vector<4x32xf32>
    %17 = arith.maximumf %15, %16 : vector<4x32xf32>
    %18 = vector.extract_strided_slice %14 {offsets = [0, 0], sizes = [4, 32], strides = [1, 1]} : vector<4x64xf32> to vector<4x32xf32>
    %19 = vector.extract_strided_slice %14 {offsets = [0, 32], sizes = [4, 32], strides = [1, 1]} : vector<4x64xf32> to vector<4x32xf32>
    %20 = arith.addf %18, %19 : vector<4x32xf32>
    %21 = vector.extract_strided_slice %17 {offsets = [0, 0], sizes = [4, 16], strides = [1, 1]} : vector<4x32xf32> to vector<4x16xf32>
    %22 = vector.extract_strided_slice %17 {offsets = [0, 16], sizes = [4, 16], strides = [1, 1]} : vector<4x32xf32> to vector<4x16xf32>
    %23 = arith.maximumf %21, %22 : vector<4x16xf32>
    %24 = vector.extract_strided_slice %20 {offsets = [0, 0], sizes = [4, 16], strides = [1, 1]} : vector<4x32xf32> to vector<4x16xf32>
    %25 = vector.extract_strided_slice %20 {offsets = [0, 16], sizes = [4, 16], strides = [1, 1]} : vector<4x32xf32> to vector<4x16xf32>
    %26 = arith.addf %24, %25 : vector<4x16xf32>
    %cst = arith.constant 6.250000e-02 : f32
    %27 = vector.broadcast %cst : f32 to vector<4x16xf32>
    %28 = arith.mulf %26, %27 : vector<4x16xf32>
    %29 = vector.extract_strided_slice %2 {offsets = [0, 0], sizes = [4, 16], strides = [1, 1]} : vector<4x256xf32> to vector<4x16xf32>
    %cst_2 = arith.constant dense<0xFF800000> : vector<4xf32>
    %30 = vector.multi_reduction <maximumf>, %29, %cst_2 [1] : vector<4x16xf32> to vector<4xf32>
    %31 = vector.shape_cast %30 : vector<4xf32> to vector<4x1xf32>
    %cst_3 = arith.constant dense<0.000000e+00> : vector<4xf32>
    %32 = vector.multi_reduction <add>, %29, %cst_3 [1] : vector<4x16xf32> to vector<4xf32>
    %33 = vector.shape_cast %32 : vector<4xf32> to vector<4x1xf32>
    %34 = vector.extract_strided_slice %2 {offsets = [0, 16], sizes = [4, 16], strides = [1, 1]} : vector<4x256xf32> to vector<4x16xf32>
    %cst_4 = arith.constant dense<0xFF800000> : vector<4xf32>
    %35 = vector.multi_reduction <maximumf>, %34, %cst_4 [1] : vector<4x16xf32> to vector<4xf32>
    %36 = vector.shape_cast %35 : vector<4xf32> to vector<4x1xf32>
    %cst_5 = arith.constant dense<0.000000e+00> : vector<4xf32>
    %37 = vector.multi_reduction <add>, %34, %cst_5 [1] : vector<4x16xf32> to vector<4xf32>
    %38 = vector.shape_cast %37 : vector<4xf32> to vector<4x1xf32>
    %39 = vector.extract_strided_slice %2 {offsets = [0, 32], sizes = [4, 16], strides = [1, 1]} : vector<4x256xf32> to vector<4x16xf32>
    %cst_6 = arith.constant dense<0xFF800000> : vector<4xf32>
    %40 = vector.multi_reduction <maximumf>, %39, %cst_6 [1] : vector<4x16xf32> to vector<4xf32>
    %41 = vector.shape_cast %40 : vector<4xf32> to vector<4x1xf32>
    %cst_7 = arith.constant dense<0.000000e+00> : vector<4xf32>
    %42 = vector.multi_reduction <add>, %39, %cst_7 [1] : vector<4x16xf32> to vector<4xf32>
    %43 = vector.shape_cast %42 : vector<4xf32> to vector<4x1xf32>
    %44 = vector.extract_strided_slice %2 {offsets = [0, 48], sizes = [4, 16], strides = [1, 1]} : vector<4x256xf32> to vector<4x16xf32>
    %cst_8 = arith.constant dense<0xFF800000> : vector<4xf32>
    %45 = vector.multi_reduction <maximumf>, %44, %cst_8 [1] : vector<4x16xf32> to vector<4xf32>
    %46 = vector.shape_cast %45 : vector<4xf32> to vector<4x1xf32>
    %cst_9 = arith.constant dense<0.000000e+00> : vector<4xf32>
    %47 = vector.multi_reduction <add>, %44, %cst_9 [1] : vector<4x16xf32> to vector<4xf32>
    %48 = vector.shape_cast %47 : vector<4xf32> to vector<4x1xf32>
    %49 = vector.extract_strided_slice %2 {offsets = [0, 64], sizes = [4, 16], strides = [1, 1]} : vector<4x256xf32> to vector<4x16xf32>
    %cst_10 = arith.constant dense<0xFF800000> : vector<4xf32>
    %50 = vector.multi_reduction <maximumf>, %49, %cst_10 [1] : vector<4x16xf32> to vector<4xf32>
    %51 = vector.shape_cast %50 : vector<4xf32> to vector<4x1xf32>
    %cst_11 = arith.constant dense<0.000000e+00> : vector<4xf32>
    %52 = vector.multi_reduction <add>, %49, %cst_11 [1] : vector<4x16xf32> to vector<4xf32>
    %53 = vector.shape_cast %52 : vector<4xf32> to vector<4x1xf32>
    %54 = vector.extract_strided_slice %2 {offsets = [0, 80], sizes = [4, 16], strides = [1, 1]} : vector<4x256xf32> to vector<4x16xf32>
    %cst_12 = arith.constant dense<0xFF800000> : vector<4xf32>
    %55 = vector.multi_reduction <maximumf>, %54, %cst_12 [1] : vector<4x16xf32> to vector<4xf32>
    %56 = vector.shape_cast %55 : vector<4xf32> to vector<4x1xf32>
    %cst_13 = arith.constant dense<0.000000e+00> : vector<4xf32>
    %57 = vector.multi_reduction <add>, %54, %cst_13 [1] : vector<4x16xf32> to vector<4xf32>
    %58 = vector.shape_cast %57 : vector<4xf32> to vector<4x1xf32>
    %59 = vector.extract_strided_slice %2 {offsets = [0, 96], sizes = [4, 16], strides = [1, 1]} : vector<4x256xf32> to vector<4x16xf32>
    %cst_14 = arith.constant dense<0xFF800000> : vector<4xf32>
    %60 = vector.multi_reduction <maximumf>, %59, %cst_14 [1] : vector<4x16xf32> to vector<4xf32>
    %61 = vector.shape_cast %60 : vector<4xf32> to vector<4x1xf32>
    %cst_15 = arith.constant dense<0.000000e+00> : vector<4xf32>
    %62 = vector.multi_reduction <add>, %59, %cst_15 [1] : vector<4x16xf32> to vector<4xf32>
    %63 = vector.shape_cast %62 : vector<4xf32> to vector<4x1xf32>
    %64 = vector.extract_strided_slice %2 {offsets = [0, 112], sizes = [4, 16], strides = [1, 1]} : vector<4x256xf32> to vector<4x16xf32>
    %cst_16 = arith.constant dense<0xFF800000> : vector<4xf32>
    %65 = vector.multi_reduction <maximumf>, %64, %cst_16 [1] : vector<4x16xf32> to vector<4xf32>
    %66 = vector.shape_cast %65 : vector<4xf32> to vector<4x1xf32>
    %cst_17 = arith.constant dense<0.000000e+00> : vector<4xf32>
    %67 = vector.multi_reduction <add>, %64, %cst_17 [1] : vector<4x16xf32> to vector<4xf32>
    %68 = vector.shape_cast %67 : vector<4xf32> to vector<4x1xf32>
    %69 = vector.extract_strided_slice %2 {offsets = [0, 128], sizes = [4, 16], strides = [1, 1]} : vector<4x256xf32> to vector<4x16xf32>
    %cst_18 = arith.constant dense<0xFF800000> : vector<4xf32>
    %70 = vector.multi_reduction <maximumf>, %69, %cst_18 [1] : vector<4x16xf32> to vector<4xf32>
    %71 = vector.shape_cast %70 : vector<4xf32> to vector<4x1xf32>
    %cst_19 = arith.constant dense<0.000000e+00> : vector<4xf32>
    %72 = vector.multi_reduction <add>, %69, %cst_19 [1] : vector<4x16xf32> to vector<4xf32>
    %73 = vector.shape_cast %72 : vector<4xf32> to vector<4x1xf32>
    %74 = vector.extract_strided_slice %2 {offsets = [0, 144], sizes = [4, 16], strides = [1, 1]} : vector<4x256xf32> to vector<4x16xf32>
    %cst_20 = arith.constant dense<0xFF800000> : vector<4xf32>
    %75 = vector.multi_reduction <maximumf>, %74, %cst_20 [1] : vector<4x16xf32> to vector<4xf32>
    %76 = vector.shape_cast %75 : vector<4xf32> to vector<4x1xf32>
    %cst_21 = arith.constant dense<0.000000e+00> : vector<4xf32>
    %77 = vector.multi_reduction <add>, %74, %cst_21 [1] : vector<4x16xf32> to vector<4xf32>
    %78 = vector.shape_cast %77 : vector<4xf32> to vector<4x1xf32>
    %79 = vector.extract_strided_slice %2 {offsets = [0, 160], sizes = [4, 16], strides = [1, 1]} : vector<4x256xf32> to vector<4x16xf32>
    %cst_22 = arith.constant dense<0xFF800000> : vector<4xf32>
    %80 = vector.multi_reduction <maximumf>, %79, %cst_22 [1] : vector<4x16xf32> to vector<4xf32>
    %81 = vector.shape_cast %80 : vector<4xf32> to vector<4x1xf32>
    %cst_23 = arith.constant dense<0.000000e+00> : vector<4xf32>
    %82 = vector.multi_reduction <add>, %79, %cst_23 [1] : vector<4x16xf32> to vector<4xf32>
    %83 = vector.shape_cast %82 : vector<4xf32> to vector<4x1xf32>
    %84 = vector.extract_strided_slice %2 {offsets = [0, 176], sizes = [4, 16], strides = [1, 1]} : vector<4x256xf32> to vector<4x16xf32>
    %cst_24 = arith.constant dense<0xFF800000> : vector<4xf32>
    %85 = vector.multi_reduction <maximumf>, %84, %cst_24 [1] : vector<4x16xf32> to vector<4xf32>
    %86 = vector.shape_cast %85 : vector<4xf32> to vector<4x1xf32>
    %cst_25 = arith.constant dense<0.000000e+00> : vector<4xf32>
    %87 = vector.multi_reduction <add>, %84, %cst_25 [1] : vector<4x16xf32> to vector<4xf32>
    %88 = vector.shape_cast %87 : vector<4xf32> to vector<4x1xf32>
    %89 = vector.extract_strided_slice %2 {offsets = [0, 192], sizes = [4, 16], strides = [1, 1]} : vector<4x256xf32> to vector<4x16xf32>
    %cst_26 = arith.constant dense<0xFF800000> : vector<4xf32>
    %90 = vector.multi_reduction <maximumf>, %89, %cst_26 [1] : vector<4x16xf32> to vector<4xf32>
    %91 = vector.shape_cast %90 : vector<4xf32> to vector<4x1xf32>
    %cst_27 = arith.constant dense<0.000000e+00> : vector<4xf32>
    %92 = vector.multi_reduction <add>, %89, %cst_27 [1] : vector<4x16xf32> to vector<4xf32>
    %93 = vector.shape_cast %92 : vector<4xf32> to vector<4x1xf32>
    %94 = vector.extract_strided_slice %2 {offsets = [0, 208], sizes = [4, 16], strides = [1, 1]} : vector<4x256xf32> to vector<4x16xf32>
    %cst_28 = arith.constant dense<0xFF800000> : vector<4xf32>
    %95 = vector.multi_reduction <maximumf>, %94, %cst_28 [1] : vector<4x16xf32> to vector<4xf32>
    %96 = vector.shape_cast %95 : vector<4xf32> to vector<4x1xf32>
    %cst_29 = arith.constant dense<0.000000e+00> : vector<4xf32>
    %97 = vector.multi_reduction <add>, %94, %cst_29 [1] : vector<4x16xf32> to vector<4xf32>
    %98 = vector.shape_cast %97 : vector<4xf32> to vector<4x1xf32>
    %99 = vector.extract_strided_slice %2 {offsets = [0, 224], sizes = [4, 16], strides = [1, 1]} : vector<4x256xf32> to vector<4x16xf32>
    %cst_30 = arith.constant dense<0xFF800000> : vector<4xf32>
    %100 = vector.multi_reduction <maximumf>, %99, %cst_30 [1] : vector<4x16xf32> to vector<4xf32>
    %101 = vector.shape_cast %100 : vector<4xf32> to vector<4x1xf32>
    %cst_31 = arith.constant dense<0.000000e+00> : vector<4xf32>
    %102 = vector.multi_reduction <add>, %99, %cst_31 [1] : vector<4x16xf32> to vector<4xf32>
    %103 = vector.shape_cast %102 : vector<4xf32> to vector<4x1xf32>
    %104 = vector.extract_strided_slice %2 {offsets = [0, 240], sizes = [4, 16], strides = [1, 1]} : vector<4x256xf32> to vector<4x16xf32>
    %cst_32 = arith.constant dense<0xFF800000> : vector<4xf32>
    %105 = vector.multi_reduction <maximumf>, %104, %cst_32 [1] : vector<4x16xf32> to vector<4xf32>
    %106 = vector.shape_cast %105 : vector<4xf32> to vector<4x1xf32>
    %cst_33 = arith.constant dense<0.000000e+00> : vector<4xf32>
    %107 = vector.multi_reduction <add>, %104, %cst_33 [1] : vector<4x16xf32> to vector<4xf32>
    %108 = vector.shape_cast %107 : vector<4xf32> to vector<4x1xf32>
    %109 = tpu.concatenate %31, %36, %41, %46, %51, %56, %61, %66, %71, %76, %81, %86, %91, %96, %101, %106 in 1 : vector<4x1xf32>, vector<4x1xf32>, vector<4x1xf32>, vector<4x1xf32>, vector<4x1xf32>, vector<4x1xf32>, vector<4x1xf32>, vector<4x1xf32>, vector<4x1xf32>, vector<4x1xf32>, vector<4x1xf32>, vector<4x1xf32>, vector<4x1xf32>, vector<4x1xf32>, vector<4x1xf32>, vector<4x1xf32> -> vector<4x16xf32>
    %110 = tpu.concatenate %33, %38, %43, %48, %53, %58, %63, %68, %73, %78, %83, %88, %93, %98, %103, %108 in 1 : vector<4x1xf32>, vector<4x1xf32>, vector<4x1xf32>, vector<4x1xf32>, vector<4x1xf32>, vector<4x1xf32>, vector<4x1xf32>, vector<4x1xf32>, vector<4x1xf32>, vector<4x1xf32>, vector<4x1xf32>, vector<4x1xf32>, vector<4x1xf32>, vector<4x1xf32>, vector<4x1xf32>, vector<4x1xf32> -> vector<4x16xf32>
    %cst_34 = arith.constant 6.250000e-02 : f32
    %111 = vector.broadcast %cst_34 : f32 to vector<4x16xf32>
    %112 = arith.mulf %110, %111 : vector<4x16xf32>
    %c0_35 = arith.constant 0 : index
    %113 = memref.load %arg7[%c0_35] : memref<5xf32, #tpu.memory_space<smem>>
    %114 = tpu.concatenate %23, %28 in 1 : vector<4x16xf32>, vector<4x16xf32> -> vector<4x32xf32>
    %cst_36 = arith.constant 0.000000e+00 : f32
    %115 = vector.broadcast %cst_36 : f32 to vector<3x32xf32>
    %cst_37 = arith.constant 0.000000e+00 : f32
    %116 = vector.broadcast %cst_37 : f32 to vector<3x32xf32>
    %117 = tpu.concatenate %115, %114, %116 in 0 : vector<3x32xf32>, vector<4x32xf32>, vector<3x32xf32> -> vector<10x32xf32>
    %118 = vector.extract_strided_slice %117 {offsets = [0, 0], sizes = [4, 32], strides = [1, 1]} : vector<10x32xf32> to vector<4x32xf32>
    %119 = vector.extract_strided_slice %117 {offsets = [1, 0], sizes = [4, 32], strides = [1, 1]} : vector<10x32xf32> to vector<4x32xf32>
    %120 = vector.extract_strided_slice %117 {offsets = [2, 0], sizes = [4, 32], strides = [1, 1]} : vector<10x32xf32> to vector<4x32xf32>
    %121 = vector.extract_strided_slice %117 {offsets = [3, 0], sizes = [4, 32], strides = [1, 1]} : vector<10x32xf32> to vector<4x32xf32>
    %122 = vector.extract_strided_slice %117 {offsets = [4, 0], sizes = [4, 32], strides = [1, 1]} : vector<10x32xf32> to vector<4x32xf32>
    %123 = vector.extract_strided_slice %117 {offsets = [5, 0], sizes = [4, 32], strides = [1, 1]} : vector<10x32xf32> to vector<4x32xf32>
    %124 = vector.extract_strided_slice %117 {offsets = [6, 0], sizes = [4, 32], strides = [1, 1]} : vector<10x32xf32> to vector<4x32xf32>
    %125 = tpu.concatenate %118, %119, %120, %121, %122, %123, %124 in 1 : vector<4x32xf32>, vector<4x32xf32>, vector<4x32xf32>, vector<4x32xf32>, vector<4x32xf32>, vector<4x32xf32>, vector<4x32xf32> -> vector<4x224xf32>
    %126 = arith.truncf %125 : vector<4x224xf32> to vector<4x224xbf16>
    %c0_38 = arith.constant 0 : index
    %c0_39 = arith.constant 0 : index
    %127 = vector.load %arg2[%c0_38, %c0_39] : memref<224x16xbf16, #tpu.memory_space<vmem>>, vector<224x16xbf16>
    %cst_40 = arith.constant dense<0.000000e+00> : vector<4x16xf32>
    %128 = tpu.matmul %126, %127, %cst_40 {dimension_numbers = #tpu.dot_dimension_numbers<[1], [0], [0], [1], [0, 0, 1, 1], [], []>} : vector<4x224xbf16>, vector<224x16xbf16>, vector<4x16xf32> -> vector<4x16xf32>
    %129 = vector.broadcast %113 : f32 to vector<4x16xf32>
    %130 = arith.addf %128, %129 : vector<4x16xf32>
    %131 = arith.negf %130 : vector<4x16xf32>
    %132 = math.exp %131 : vector<4x16xf32>
    %cst_41 = arith.constant 1.000000e+00 : f32
    %133 = vector.broadcast %cst_41 : f32 to vector<4x16xf32>
    %134 = arith.addf %133, %132 : vector<4x16xf32>
    %135 = arith.divf %133, %134 : vector<4x16xf32>
    %136 = arith.mulf %130, %135 : vector<4x16xf32>
    %137 = arith.negf %136 : vector<4x16xf32>
    %138 = math.exp %137 : vector<4x16xf32>
    %cst_42 = arith.constant 1.000000e+00 : f32
    %139 = vector.broadcast %cst_42 : f32 to vector<4x16xf32>
    %140 = arith.addf %139, %138 : vector<4x16xf32>
    %141 = arith.divf %139, %140 : vector<4x16xf32>
    %c1 = arith.constant 1 : index
    %142 = memref.load %arg7[%c1] : memref<5xf32, #tpu.memory_space<smem>>
    %143 = tpu.concatenate %109, %112 in 1 : vector<4x16xf32>, vector<4x16xf32> -> vector<4x32xf32>
    %cst_43 = arith.constant 0.000000e+00 : f32
    %144 = vector.broadcast %cst_43 : f32 to vector<3x32xf32>
    %cst_44 = arith.constant 0.000000e+00 : f32
    %145 = vector.broadcast %cst_44 : f32 to vector<3x32xf32>
    %146 = tpu.concatenate %144, %143, %145 in 0 : vector<3x32xf32>, vector<4x32xf32>, vector<3x32xf32> -> vector<10x32xf32>
    %147 = vector.extract_strided_slice %146 {offsets = [0, 0], sizes = [4, 32], strides = [1, 1]} : vector<10x32xf32> to vector<4x32xf32>
    %148 = vector.extract_strided_slice %146 {offsets = [1, 0], sizes = [4, 32], strides = [1, 1]} : vector<10x32xf32> to vector<4x32xf32>
    %149 = vector.extract_strided_slice %146 {offsets = [2, 0], sizes = [4, 32], strides = [1, 1]} : vector<10x32xf32> to vector<4x32xf32>
    %150 = vector.extract_strided_slice %146 {offsets = [3, 0], sizes = [4, 32], strides = [1, 1]} : vector<10x32xf32> to vector<4x32xf32>
    %151 = vector.extract_strided_slice %146 {offsets = [4, 0], sizes = [4, 32], strides = [1, 1]} : vector<10x32xf32> to vector<4x32xf32>
    %152 = vector.extract_strided_slice %146 {offsets = [5, 0], sizes = [4, 32], strides = [1, 1]} : vector<10x32xf32> to vector<4x32xf32>
    %153 = vector.extract_strided_slice %146 {offsets = [6, 0], sizes = [4, 32], strides = [1, 1]} : vector<10x32xf32> to vector<4x32xf32>
    %154 = tpu.concatenate %147, %148, %149, %150, %151, %152, %153 in 1 : vector<4x32xf32>, vector<4x32xf32>, vector<4x32xf32>, vector<4x32xf32>, vector<4x32xf32>, vector<4x32xf32>, vector<4x32xf32> -> vector<4x224xf32>
    %155 = arith.truncf %154 : vector<4x224xf32> to vector<4x224xbf16>
    %c0_45 = arith.constant 0 : index
    %c0_46 = arith.constant 0 : index
    %156 = vector.load %arg3[%c0_45, %c0_46] : memref<224x16xbf16, #tpu.memory_space<vmem>>, vector<224x16xbf16>
    %cst_47 = arith.constant dense<0.000000e+00> : vector<4x16xf32>
    %157 = tpu.matmul %155, %156, %cst_47 {dimension_numbers = #tpu.dot_dimension_numbers<[1], [0], [0], [1], [0, 0, 1, 1], [], []>} : vector<4x224xbf16>, vector<224x16xbf16>, vector<4x16xf32> -> vector<4x16xf32>
    %158 = vector.broadcast %142 : f32 to vector<4x16xf32>
    %159 = arith.addf %157, %158 : vector<4x16xf32>
    %160 = arith.negf %159 : vector<4x16xf32>
    %161 = math.exp %160 : vector<4x16xf32>
    %cst_48 = arith.constant 1.000000e+00 : f32
    %162 = vector.broadcast %cst_48 : f32 to vector<4x16xf32>
    %163 = arith.addf %162, %161 : vector<4x16xf32>
    %164 = arith.divf %162, %163 : vector<4x16xf32>
    %165 = arith.mulf %159, %164 : vector<4x16xf32>
    %166 = arith.negf %165 : vector<4x16xf32>
    %167 = math.exp %166 : vector<4x16xf32>
    %cst_49 = arith.constant 1.000000e+00 : f32
    %168 = vector.broadcast %cst_49 : f32 to vector<4x16xf32>
    %169 = arith.addf %168, %167 : vector<4x16xf32>
    %170 = arith.divf %168, %169 : vector<4x16xf32>
    %cst_50 = arith.constant dense<0xFF800000> : vector<256xf32>
    %171 = vector.multi_reduction <maximumf>, %2, %cst_50 [0] : vector<4x256xf32> to vector<256xf32>
    %172 = vector.shape_cast %171 : vector<256xf32> to vector<1x256xf32>
    %cst_51 = arith.constant dense<0.000000e+00> : vector<256xf32>
    %173 = vector.multi_reduction <add>, %2, %cst_51 [0] : vector<4x256xf32> to vector<256xf32>
    %174 = vector.shape_cast %173 : vector<256xf32> to vector<1x256xf32>
    %cst_52 = arith.constant 2.500000e-01 : f32
    %175 = vector.broadcast %cst_52 : f32 to vector<1x256xf32>
    %176 = arith.mulf %174, %175 : vector<1x256xf32>
    %c2 = arith.constant 2 : index
    %177 = memref.load %arg7[%c2] : memref<5xf32, #tpu.memory_space<smem>>
    %178 = vector.broadcast %177 : f32 to vector<1x256xf32>
    %179 = arith.mulf %178, %172 : vector<1x256xf32>
    %c3 = arith.constant 3 : index
    %180 = memref.load %arg7[%c3] : memref<5xf32, #tpu.memory_space<smem>>
    %181 = vector.broadcast %180 : f32 to vector<1x256xf32>
    %182 = arith.mulf %181, %176 : vector<1x256xf32>
    %183 = arith.addf %179, %182 : vector<1x256xf32>
    %c4 = arith.constant 4 : index
    %184 = memref.load %arg7[%c4] : memref<5xf32, #tpu.memory_space<smem>>
    %185 = vector.broadcast %184 : f32 to vector<1x256xf32>
    %186 = arith.addf %183, %185 : vector<1x256xf32>
    %187 = arith.negf %186 : vector<1x256xf32>
    %188 = math.exp %187 : vector<1x256xf32>
    %cst_53 = arith.constant 1.000000e+00 : f32
    %189 = vector.broadcast %cst_53 : f32 to vector<1x256xf32>
    %190 = arith.addf %189, %188 : vector<1x256xf32>
    %191 = arith.divf %189, %190 : vector<1x256xf32>
    %192 = arith.mulf %186, %191 : vector<1x256xf32>
    %193 = arith.negf %192 : vector<1x256xf32>
    %194 = math.exp %193 : vector<1x256xf32>
    %cst_54 = arith.constant 1.000000e+00 : f32
    %195 = vector.broadcast %cst_54 : f32 to vector<1x256xf32>
    %196 = arith.addf %195, %194 : vector<1x256xf32>
    %197 = arith.divf %195, %196 : vector<1x256xf32>
    %198 = tpu.concatenate %141, %141, %141, %141, %141, %141, %141, %141, %141, %141, %141, %141, %141, %141, %141, %141 in 1 : vector<4x16xf32>, vector<4x16xf32>, vector<4x16xf32>, vector<4x16xf32>, vector<4x16xf32>, vector<4x16xf32>, vector<4x16xf32>, vector<4x16xf32>, vector<4x16xf32>, vector<4x16xf32>, vector<4x16xf32>, vector<4x16xf32>, vector<4x16xf32>, vector<4x16xf32>, vector<4x16xf32>, vector<4x16xf32> -> vector<4x256xf32>
    %199 = arith.mulf %2, %198 : vector<4x256xf32>
    %200 = arith.truncf %199 : vector<4x256xf32> to vector<4x256xbf16>
    %201 = vector.extract_strided_slice %2 {offsets = [0, 0], sizes = [4, 16], strides = [1, 1]} : vector<4x256xf32> to vector<4x16xf32>
    %202 = vector.extract_strided_slice %170 {offsets = [0, 0], sizes = [4, 1], strides = [1, 1]} : vector<4x16xf32> to vector<4x1xf32>
    %203 = vector.broadcast %202 : vector<4x1xf32> to vector<4x16xf32>
    %204 = arith.mulf %201, %203 : vector<4x16xf32>
    %205 = vector.extract_strided_slice %2 {offsets = [0, 16], sizes = [4, 16], strides = [1, 1]} : vector<4x256xf32> to vector<4x16xf32>
    %206 = vector.extract_strided_slice %170 {offsets = [0, 1], sizes = [4, 1], strides = [1, 1]} : vector<4x16xf32> to vector<4x1xf32>
    %207 = vector.broadcast %206 : vector<4x1xf32> to vector<4x16xf32>
    %208 = arith.mulf %205, %207 : vector<4x16xf32>
    %209 = vector.extract_strided_slice %2 {offsets = [0, 32], sizes = [4, 16], strides = [1, 1]} : vector<4x256xf32> to vector<4x16xf32>
    %210 = vector.extract_strided_slice %170 {offsets = [0, 2], sizes = [4, 1], strides = [1, 1]} : vector<4x16xf32> to vector<4x1xf32>
    %211 = vector.broadcast %210 : vector<4x1xf32> to vector<4x16xf32>
    %212 = arith.mulf %209, %211 : vector<4x16xf32>
    %213 = vector.extract_strided_slice %2 {offsets = [0, 48], sizes = [4, 16], strides = [1, 1]} : vector<4x256xf32> to vector<4x16xf32>
    %214 = vector.extract_strided_slice %170 {offsets = [0, 3], sizes = [4, 1], strides = [1, 1]} : vector<4x16xf32> to vector<4x1xf32>
    %215 = vector.broadcast %214 : vector<4x1xf32> to vector<4x16xf32>
    %216 = arith.mulf %213, %215 : vector<4x16xf32>
    %217 = vector.extract_strided_slice %2 {offsets = [0, 64], sizes = [4, 16], strides = [1, 1]} : vector<4x256xf32> to vector<4x16xf32>
    %218 = vector.extract_strided_slice %170 {offsets = [0, 4], sizes = [4, 1], strides = [1, 1]} : vector<4x16xf32> to vector<4x1xf32>
    %219 = vector.broadcast %218 : vector<4x1xf32> to vector<4x16xf32>
    %220 = arith.mulf %217, %219 : vector<4x16xf32>
    %221 = vector.extract_strided_slice %2 {offsets = [0, 80], sizes = [4, 16], strides = [1, 1]} : vector<4x256xf32> to vector<4x16xf32>
    %222 = vector.extract_strided_slice %170 {offsets = [0, 5], sizes = [4, 1], strides = [1, 1]} : vector<4x16xf32> to vector<4x1xf32>
    %223 = vector.broadcast %222 : vector<4x1xf32> to vector<4x16xf32>
    %224 = arith.mulf %221, %223 : vector<4x16xf32>
    %225 = vector.extract_strided_slice %2 {offsets = [0, 96], sizes = [4, 16], strides = [1, 1]} : vector<4x256xf32> to vector<4x16xf32>
    %226 = vector.extract_strided_slice %170 {offsets = [0, 6], sizes = [4, 1], strides = [1, 1]} : vector<4x16xf32> to vector<4x1xf32>
    %227 = vector.broadcast %226 : vector<4x1xf32> to vector<4x16xf32>
    %228 = arith.mulf %225, %227 : vector<4x16xf32>
    %229 = vector.extract_strided_slice %2 {offsets = [0, 112], sizes = [4, 16], strides = [1, 1]} : vector<4x256xf32> to vector<4x16xf32>
    %230 = vector.extract_strided_slice %170 {offsets = [0, 7], sizes = [4, 1], strides = [1, 1]} : vector<4x16xf32> to vector<4x1xf32>
    %231 = vector.broadcast %230 : vector<4x1xf32> to vector<4x16xf32>
    %232 = arith.mulf %229, %231 : vector<4x16xf32>
    %233 = vector.extract_strided_slice %2 {offsets = [0, 128], sizes = [4, 16], strides = [1, 1]} : vector<4x256xf32> to vector<4x16xf32>
    %234 = vector.extract_strided_slice %170 {offsets = [0, 8], sizes = [4, 1], strides = [1, 1]} : vector<4x16xf32> to vector<4x1xf32>
    %235 = vector.broadcast %234 : vector<4x1xf32> to vector<4x16xf32>
    %236 = arith.mulf %233, %235 : vector<4x16xf32>
    %237 = vector.extract_strided_slice %2 {offsets = [0, 144], sizes = [4, 16], strides = [1, 1]} : vector<4x256xf32> to vector<4x16xf32>
    %238 = vector.extract_strided_slice %170 {offsets = [0, 9], sizes = [4, 1], strides = [1, 1]} : vector<4x16xf32> to vector<4x1xf32>
    %239 = vector.broadcast %238 : vector<4x1xf32> to vector<4x16xf32>
    %240 = arith.mulf %237, %239 : vector<4x16xf32>
    %241 = vector.extract_strided_slice %2 {offsets = [0, 160], sizes = [4, 16], strides = [1, 1]} : vector<4x256xf32> to vector<4x16xf32>
    %242 = vector.extract_strided_slice %170 {offsets = [0, 10], sizes = [4, 1], strides = [1, 1]} : vector<4x16xf32> to vector<4x1xf32>
    %243 = vector.broadcast %242 : vector<4x1xf32> to vector<4x16xf32>
    %244 = arith.mulf %241, %243 : vector<4x16xf32>
    %245 = vector.extract_strided_slice %2 {offsets = [0, 176], sizes = [4, 16], strides = [1, 1]} : vector<4x256xf32> to vector<4x16xf32>
    %246 = vector.extract_strided_slice %170 {offsets = [0, 11], sizes = [4, 1], strides = [1, 1]} : vector<4x16xf32> to vector<4x1xf32>
    %247 = vector.broadcast %246 : vector<4x1xf32> to vector<4x16xf32>
    %248 = arith.mulf %245, %247 : vector<4x16xf32>
    %249 = vector.extract_strided_slice %2 {offsets = [0, 192], sizes = [4, 16], strides = [1, 1]} : vector<4x256xf32> to vector<4x16xf32>
    %250 = vector.extract_strided_slice %170 {offsets = [0, 12], sizes = [4, 1], strides = [1, 1]} : vector<4x16xf32> to vector<4x1xf32>
    %251 = vector.broadcast %250 : vector<4x1xf32> to vector<4x16xf32>
    %252 = arith.mulf %249, %251 : vector<4x16xf32>
    %253 = vector.extract_strided_slice %2 {offsets = [0, 208], sizes = [4, 16], strides = [1, 1]} : vector<4x256xf32> to vector<4x16xf32>
    %254 = vector.extract_strided_slice %170 {offsets = [0, 13], sizes = [4, 1], strides = [1, 1]} : vector<4x16xf32> to vector<4x1xf32>
    %255 = vector.broadcast %254 : vector<4x1xf32> to vector<4x16xf32>
    %256 = arith.mulf %253, %255 : vector<4x16xf32>
    %257 = vector.extract_strided_slice %2 {offsets = [0, 224], sizes = [4, 16], strides = [1, 1]} : vector<4x256xf32> to vector<4x16xf32>
    %258 = vector.extract_strided_slice %170 {offsets = [0, 14], sizes = [4, 1], strides = [1, 1]} : vector<4x16xf32> to vector<4x1xf32>
    %259 = vector.broadcast %258 : vector<4x1xf32> to vector<4x16xf32>
    %260 = arith.mulf %257, %259 : vector<4x16xf32>
    %261 = vector.extract_strided_slice %2 {offsets = [0, 240], sizes = [4, 16], strides = [1, 1]} : vector<4x256xf32> to vector<4x16xf32>
    %262 = vector.extract_strided_slice %170 {offsets = [0, 15], sizes = [4, 1], strides = [1, 1]} : vector<4x16xf32> to vector<4x1xf32>
    %263 = vector.broadcast %262 : vector<4x1xf32> to vector<4x16xf32>
    %264 = arith.mulf %261, %263 : vector<4x16xf32>
    %265 = tpu.concatenate %204, %208, %212, %216, %220, %224, %228, %232, %236, %240, %244, %248, %252, %256, %260, %264 in 1 : vector<4x16xf32>, vector<4x16xf32>, vector<4x16xf32>, vector<4x16xf32>, vector<4x16xf32>, vector<4x16xf32>, vector<4x16xf32>, vector<4x16xf32>, vector<4x16xf32>, vector<4x16xf32>, vector<4x16xf32>, vector<4x16xf32>, vector<4x16xf32>, vector<4x16xf32>, vector<4x16xf32>, vector<4x16xf32> -> vector<4x256xf32>
    %266 = arith.truncf %265 : vector<4x256xf32> to vector<4x256xbf16>
    %c0_55 = arith.constant 0 : index
    %c0_56 = arith.constant 0 : index
    %267 = vector.load %arg4[%c0_55, %c0_56] : memref<8x4xbf16, #tpu.memory_space<vmem>>, vector<8x4xbf16>
    %c0_57 = arith.constant 0 : index
    %c0_58 = arith.constant 0 : index
    %268 = vector.load %arg6[%c0_57, %c0_58] : memref<8x2xf32, #tpu.memory_space<vmem>>, vector<8x1xf32>
    %c0_59 = arith.constant 0 : index
    %c1_60 = arith.constant 1 : index
    %269 = vector.load %arg6[%c0_59, %c1_60] : memref<8x2xf32, #tpu.memory_space<vmem>>, vector<8x1xf32>
    %cst_61 = arith.constant dense<0.000000e+00> : vector<8x256xf32>
    %270 = tpu.matmul %267, %200, %cst_61 {dimension_numbers = #tpu.dot_dimension_numbers<[1], [0], [0], [1], [0, 0, 1, 1], [], []>} : vector<8x4xbf16>, vector<4x256xbf16>, vector<8x256xf32> -> vector<8x256xf32>
    %271 = vector.broadcast %268 : vector<8x1xf32> to vector<8x256xf32>
    %272 = arith.addf %270, %271 : vector<8x256xf32>
    %273 = arith.negf %272 : vector<8x256xf32>
    %274 = math.exp %273 : vector<8x256xf32>
    %cst_62 = arith.constant 1.000000e+00 : f32
    %275 = vector.broadcast %cst_62 : f32 to vector<8x256xf32>
    %276 = arith.addf %275, %274 : vector<8x256xf32>
    %277 = arith.divf %275, %276 : vector<8x256xf32>
    %278 = arith.mulf %272, %277 : vector<8x256xf32>
    %cst_63 = arith.constant dense<0.000000e+00> : vector<8x256xf32>
    %279 = tpu.matmul %267, %266, %cst_63 {dimension_numbers = #tpu.dot_dimension_numbers<[1], [0], [0], [1], [0, 0, 1, 1], [], []>} : vector<8x4xbf16>, vector<4x256xbf16>, vector<8x256xf32> -> vector<8x256xf32>
    %280 = vector.broadcast %268 : vector<8x1xf32> to vector<8x256xf32>
    %281 = arith.addf %279, %280 : vector<8x256xf32>
    %282 = arith.negf %281 : vector<8x256xf32>
    %283 = math.exp %282 : vector<8x256xf32>
    %cst_64 = arith.constant 1.000000e+00 : f32
    %284 = vector.broadcast %cst_64 : f32 to vector<8x256xf32>
    %285 = arith.addf %284, %283 : vector<8x256xf32>
    %286 = arith.divf %284, %285 : vector<8x256xf32>
    %287 = arith.mulf %281, %286 : vector<8x256xf32>
    %c0_65 = arith.constant 0 : index
    %c0_66 = arith.constant 0 : index
    %288 = vector.load %arg5[%c0_65, %c0_66] : memref<8x4xbf16, #tpu.memory_space<vmem>>, vector<8x4xbf16>
    %cst_67 = arith.constant dense<0.000000e+00> : vector<8x256xf32>
    %289 = tpu.matmul %288, %1, %cst_67 {dimension_numbers = #tpu.dot_dimension_numbers<[1], [0], [0], [1], [0, 0, 1, 1], [], []>} : vector<8x4xbf16>, vector<4x256xbf16>, vector<8x256xf32> -> vector<8x256xf32>
    %290 = vector.broadcast %269 : vector<8x1xf32> to vector<8x256xf32>
    %291 = arith.addf %289, %290 : vector<8x256xf32>
    %292 = arith.negf %291 : vector<8x256xf32>
    %293 = math.exp %292 : vector<8x256xf32>
    %cst_68 = arith.constant 1.000000e+00 : f32
    %294 = vector.broadcast %cst_68 : f32 to vector<8x256xf32>
    %295 = arith.addf %294, %293 : vector<8x256xf32>
    %296 = arith.divf %294, %295 : vector<8x256xf32>
    %297 = arith.mulf %291, %296 : vector<8x256xf32>
    %298 = vector.broadcast %197 : vector<1x256xf32> to vector<8x256xf32>
    %299 = arith.mulf %297, %298 : vector<8x256xf32>
    %300 = arith.addf %299, %278 : vector<8x256xf32>
    %301 = arith.addf %300, %287 : vector<8x256xf32>
    %cst_69 = arith.constant 0.333333343 : f32
    %302 = vector.broadcast %cst_69 : f32 to vector<8x256xf32>
    %303 = arith.mulf %301, %302 : vector<8x256xf32>
    %c0_70 = arith.constant 0 : index
    %c0_71 = arith.constant 0 : index
    %c0_72 = arith.constant 0 : index
    %304 = vector.load %arg8[%c0_70, %c0_71, %c0_72] : memref<1x8x256xf32, #tpu.memory_space<vmem>>, vector<1x8x256xf32>
    %305 = vector.shape_cast %304 : vector<1x8x256xf32> to vector<8x256xf32>
    %306 = vector.shape_cast %303 : vector<8x256xf32> to vector<1x8x256xf32>
    tpu.vector_store %arg8[%c0_70, %c0_71, %c0_72], %306 {strides = array<i32>} : memref<1x8x256xf32, #tpu.memory_space<vmem>>, vector<1x8x256xf32>,
    return
  }
  func.func @transform_0(%arg0: i32) -> (i32, i32, i32) {
    %c0_i32 = arith.constant 0 : i32
    %c0_i32_0 = arith.constant 0 : i32
    %c0_i32_1 = arith.constant 0 : i32
    return %arg0, %c0_i32, %c0_i32_0 : i32, i32, i32
  }
  func.func @transform_1(%arg0: i32) -> (i32, i32) {
    %c0_i32 = arith.constant 0 : i32
    %c0_i32_0 = arith.constant 0 : i32
    %c0_i32_1 = arith.constant 0 : i32
    return %c0_i32, %c0_i32_0 : i32, i32
  }
  func.func @transform_2(%arg0: i32) -> (i32, i32) {
    %c0_i32 = arith.constant 0 : i32
    %c0_i32_0 = arith.constant 0 : i32
    %c0_i32_1 = arith.constant 0 : i32
    return %c0_i32, %c0_i32_0 : i32, i32
  }
  func.func @transform_3(%arg0: i32) -> (i32, i32) {
    %c0_i32 = arith.constant 0 : i32
    %c0_i32_0 = arith.constant 0 : i32
    %c0_i32_1 = arith.constant 0 : i32
    return %c0_i32, %c0_i32_0 : i32, i32
  }
  func.func @transform_4(%arg0: i32) -> (i32, i32) {
    %c0_i32 = arith.constant 0 : i32
    %c0_i32_0 = arith.constant 0 : i32
    %c0_i32_1 = arith.constant 0 : i32
    return %c0_i32, %c0_i32_0 : i32, i32
  }
  func.func @transform_5(%arg0: i32) -> (i32, i32) {
    %c0_i32 = arith.constant 0 : i32
    %c0_i32_0 = arith.constant 0 : i32
    %c0_i32_1 = arith.constant 0 : i32
    return %c0_i32, %c0_i32_0 : i32, i32
  }
  func.func @transform_6(%arg0: i32) -> i32 {
    %c0_i32 = arith.constant 0 : i32
    %c0_i32_0 = arith.constant 0 : i32
    return %c0_i32 : i32
  }
  func.func @transform_7(%arg0: i32) -> (i32, i32, i32) {
    %c0_i32 = arith.constant 0 : i32
    %c0_i32_0 = arith.constant 0 : i32
    %c0_i32_1 = arith.constant 0 : i32
    return %arg0, %c0_i32, %c0_i32_0 : i32, i32, i32
  }
}

</mosaic_0001>

<bundles_post_ra>
// kernel: tpu_custom_call.1
= control target key start
LH: loop header
LB: loop body
LE: loop exit
PB: predicated region body
PF: predicated region fallthrough
CT: control target
= control target key end

     0   :  { %12 = vsyncpa [#allocation4], 0  ;;  %s2952_s0 = inlined_call_operand.vmem [shape: bf16[2,4,256], index: 0, kind: input, shape index: {}]   ;;  %s2953_s1 = inlined_call_operand.vmem [shape: bf16[224,16], index: 1, kind: input, shape index: {}]   ;;  %s2954_s2 = inlined_call_operand.vmem [shape: bf16[224,16], index: 2, kind: input, shape index: {}]   ;;  %s2955_s3 = inlined_call_operand.vmem [shape: bf16[8,4], index: 3, kind: input, shape index: {}]   ;;  %s2956_s4 = inlined_call_operand.vmem [shape: bf16[8,4], index: 4, kind: input, shape index: {}]   ;;  %s2957_s5 = inlined_call_operand.vmem [shape: f32[8,2], index: 5, kind: input, shape index: {}]   ;;  %s2958_s6 = inlined_call_operand.vmem [shape: f32[5], index: 6, kind: input, shape index: {}]   ;;  %s2959_s7 = inlined_call_operand.hbm [shape: f32[2,8,256], index: 7, kind: output, shape index: {}]  }
   0x1   :  { %13 = vsyncpa [#allocation3], 0 }
   0x2   :  { %15 = vsyncpa [#allocation3 + $0x1], 0  ;;  %s2244_s24 = smov 0   ;;  %s2246_s25 = smov 0  }
   0x3   :  { %s2248_s26 = smov 0   ;;  %s2250_s27 = smov 0  }
   0x4 LB: > { %s2265_s28 = sadd.s32 4294967295, %s2177_s27   ;;  %s1730_s29 = sadd.s32 4294967294, %s2177_s27   ;;  %s2177_s27 = sphi %s2250_s27, %s2998_s27   ;;  %s2173_s26 = sphi %s2248_s26, %s2997_s26   ;;  %s2169_s25 = sphi %s2246_s25, %s2996_s25   ;;  %s2165_s24 = sphi %s2244_s24, %s2995_s24  }
   0x5   : > { %s2269_s30 = sadd.s32 1, %s2177_s27   ;;  %s180_s8 = sadd.s32 1, %s2173_s26 }
   0x6   : > { %s177_s9 = ssub.s32 %s2177_s27, %s2269_s30  ;;  %p190_p0 = scmp.ne.s32.totalorder %s2173_s26, %s2169_s25 }
   0x7   : > { %p178_p1 = scmp.eq.s32.totalorder %s177_s9, 0  ;;  %p191_p2 = scmp.eq.s32.totalorder %s2265_s28, 1 }
   0x8   : > { %p196_p3 = scmp.ne.s32.totalorder %s2169_s25, %s2165_s24  ;;  %p197_p4 = scmp.eq.s32.totalorder %s1730_s29, 1 }
   0x9   : > { %s2280_s10 = scalar_select %p178_p1, %s2173_s26, %s180_s8  }
   0xa   : > { %p2282_p5 = por %p191_p2, %p190_p0  ;;  %p2286_p6 = por %p197_p4, %p196_p3 }
   0xb   : > { %p1731_p7 = scmp.ge.s32.totalorder %s2177_s27, 1  ;;  %p204_p8 = scmp.lt.s32.totalorder %s2177_s27, 3 }
   0xc   : > { %p1926_p9 = scmp.eq.s32.totalorder %s2265_s28, 0  ;;  %s231_s15 = sshll.u32 %s2958_s6, 4  ;;  %s232_s15 = int_to_ptr.vmem [resolvable:$true] %s231_s15 }
   0xd   : > { %p205_p10 = pnand %p1731_p7, %p204_p8  ;;  %s2179_s16 = smov [#allocation2]  }
   0xf   : > { %p1918_p11 = pneg %p205_p10  ;;  %252 = sbr.rel (%p205_p10) target bundleno = 1737 (0x6c9), region = 48 }
  0x11   : > { %p1919_p12 = pnand %p1926_p9, %p1918_p11 }
  0x13   : > { %1921 = dma.vmem_to_smem (!%p1919_p12), %s232_s15, 16, %s2179_s16, [#allocation4]  }
  0x14   : > { %2156 = dma.done.wait (%p1926_p9), [#allocation4], 16  }
  0x15   : > { %2158 = vsyncadd (%p1926_p9), [#allocation4], 4294967280 }
  0x16   : > { %259 = sfence }
  0x17   : > { %p286_p13 = scmp.lt.s32.totalorder %s2265_s28, 1  ;;  %s2180_s22 = smov 64   ;;  %vm330_vm0 = vcmask 125952   ;;  %vm361_vm1 = vcmask 519552   ;;  %vm373_vm2 = vcmask 650752   ;;  %vm545_vm3 = vcmask 7168  }
  0x18   : > { %s2181_s23 = smov 96   ;;  %s2182_s29 = smov 32   ;;  %vm547_vm4 = vcmask 15360   ;;  %vm549_vm5 = vcmask 23552   ;;  %vm337_vm6 = vcmask 257152   ;;  %vm349_vm7 = vcmask 388352  }
  0x19   : > { %s287_s17 = scalar_select %p286_p13, %s2265_s28, 1  ;;  %vm551_vm8 = vcmask 31744   ;;  %vm553_vm9 = vcmask 39936   ;;  %vm409_vm10 = vcmask 1044352   ;;  %vm397_vm11 = vcmask 913152  }
  0x1a   : > { %s2961_s8 = smov 112   ;;  %s2963_s9 = smov 80   ;;  %vm555_vm12 = vcmask 48128   ;;  %vm557_vm13 = vcmask 56320   ;;  %vm559_vm14 = vcmask 64512   ;;  %vm561_vm15 = vcmask 72704  }
  0x1b   : > { %s1882_s18 = sshll.u32 %s287_s17, 2  ;;  %s2185_s13 = smov 48  }
  0x1c   : > { %s290_s21 = scalar_lea.vmem %s2952_s0, %s1882_s18  ;;  %s2965_s14 = smov 16  }
  0x1d   : > { %v2301_v0 = vld [vmem:[%s290_s21] sm:$0xf]  ;;  %s2970_s21 = smov 16   ;;  %s1798_s15 = sld [smem:[#allocation2 + $0x1]] }
  0x1e   : > { %v2304_v1 = vunpack.c.l.bf16 %v2301_v0  ;;  %s2641_s16 = sld [smem:[#allocation2 + $0x2]] }
  0x1f   : > { %s2645_s17 = sld [smem:[#allocation2 + $0x3]] }
  0x20   : > { %v2307_v2 = vrot.slane %v2304_v1, 4  ;;  %341 = vst [vmem:[#allocation1] ss:$2 sm:$0xff] %v2304_v1  ;;  %v331_v25 = vsel %vm330_vm0, %v2304_v1, -inf  ;;  %v334_v39 = vsel %vm330_vm0, %v2304_v1, 0.0  ;;  %v362_v44 = vsel %vm361_vm1, %v2304_v1, -inf }
  0x21   : > { %v374_v47 = vsel %vm373_vm2, %v2304_v1, -inf  ;;  %vm2960_vm1 = vcmask 80896   ;;  %vm385_vm2 = vcmask 781952   ;;  %s1860_s20 = sld [smem:[#allocation2 + $0x4]] }
  0x22   : > { %v298_v3 = vadd.f32 %v2307_v2, %v2304_v1  ;;  %v297_v19 = vmax.f32 %v2304_v1, %v2307_v2 }
  0x24   : > { %305 = vrot.lane.b32.xlu0 %v298_v3, %s2180_s22 }
  0x27   : > { %v342_v4 = vld.sshfl [vmem:[#allocation1] sm:$0xff pattern:$0x75316420] }
  0x28   : > { %353 = vst [vmem:[#allocation1] ss:$2 sm:$0xff] %v2304_v1 }
  0x2f   : > { %v354_v5 = vld.sshfl [vmem:[#allocation1] sm:$0xff pattern:$0x75316420] }
  0x30   : > { %365 = vst [vmem:[#allocation1] ss:$2 sm:$0xff] %v2304_v1  ;;  %355 = vrot.lane.b32.xlu2 %v354_v5, %s2181_s23 }
  0x37   : > { %v366_v6 = vld.sshfl [vmem:[#allocation1] sm:$0xff pattern:$0x75316420] }
  0x38   : > { %377 = vst [vmem:[#allocation1] ss:$2 sm:$0xff] %v2304_v1 }
  0x3f   : > { %v378_v7 = vld.sshfl [vmem:[#allocation1] sm:$0xff pattern:$0x75316420] }
  0x40   : > { %389 = vst [vmem:[#allocation1] ss:$2 sm:$0xff] %v2304_v1  ;;  %379 = vrot.lane.b32.xlu2 %v378_v7, %s2180_s22  ;;  %v350_v7 = vsel %vm349_vm7, %v2304_v1, -inf  ;;  %vm569_vm7 = vcmask 105472  }
  0x47   : > { %v390_v8 = vld.sshfl [vmem:[#allocation1] sm:$0xff pattern:$0x75316420] }
  0x48   : > { %401 = vst [vmem:[#allocation1] ss:$2 sm:$0xff] %v2304_v1 }
  0x4f   : > { %v402_v9 = vld.sshfl [vmem:[#allocation1] sm:$0xff pattern:$0x75316420] }
  0x50   : > { %413 = vst [vmem:[#allocation1] ss:$2 sm:$0xff] %v2304_v1  ;;  %403 = vrot.lane.b32.xlu2 %v402_v9, %s2182_s29 }
  0x57   : > { %v414_v10 = vld.sshfl [vmem:[#allocation1] sm:$0xff pattern:$0x75316420] }
  0x58   : > { %421 = vst [vmem:[#allocation1] ss:$2 sm:$0xff] %v2304_v1 }
  0x5f   : > { %v2320_v11 = vld.sshfl [vmem:[#allocation1 + $0x8] sm:$0xff pattern:$0x75316420] }
  0x60   : > { %427 = vst [vmem:[#allocation1] ss:$2 sm:$0xff] %v2304_v1 }
  0x67   : > { %v2323_v12 = vld.sshfl [vmem:[#allocation1 + $0x8] sm:$0xff pattern:$0x75316420] }
  0x68   : > { %433 = vst [vmem:[#allocation1] ss:$2 sm:$0xff] %v2304_v1  ;;  %v430_v45 = vsel %vm330_vm0, %v2323_v12, 0.0 }
  0x6f   : > { %v2326_v13 = vld.sshfl [vmem:[#allocation1 + $0x8] sm:$0xff pattern:$0x75316420] }
  0x70   : > { %441 = vst [vmem:[#allocation1] ss:$2 sm:$0xff] %v2304_v1 }
  0x77   : > { %v442_v14 = vld.sshfl [vmem:[#allocation1 + $0x8] sm:$0xff pattern:$0x75316420] }
  0x78   : > { %449 = vst [vmem:[#allocation1] ss:$2 sm:$0xff] %v2304_v1  ;;  %443 = vrot.lane.b32.xlu2 %v442_v14, %s2961_s8 }
  0x7f   : > { %v450_v15 = vld.sshfl [vmem:[#allocation1 + $0x8] sm:$0xff pattern:$0x75316420] }
  0x80   : > { %457 = vst [vmem:[#allocation1] ss:$2 sm:$0xff] %v2304_v1 }
  0x87   : > { %v458_v16 = vld.sshfl [vmem:[#allocation1 + $0x8] sm:$0xff pattern:$0x75316420] }
  0x88   : > { %465 = vst [vmem:[#allocation1] ss:$2 sm:$0xff] %v2304_v1 }
  0x8a   : > { %v356_v31 = vpop.permute.xlu2 %355 }
  0x8b   : > { %v358_v33 = vsel %vm330_vm0, %v356_v31, 0.0  ;;  %v410_v31 = vsel %vm409_vm10, %v2304_v1, -inf  ;;  %vm603_vm10 = vcmask 1042432  }
  0x8f   : > { %v466_v17 = vld.sshfl [vmem:[#allocation1 + $0x8] sm:$0xff pattern:$0x75316420] }
  0x90   : > { %473 = vst [vmem:[#allocation1] ss:$2 sm:$0xff] %v2304_v1 }
  0x96   : > { %v306_v24 = vpop.permute.xlu0 %305 }
  0x97   : > { %v474_v18 = vld.sshfl [vmem:[#allocation1 + $0x8] sm:$0xff pattern:$0x75316420]  ;;  %v2354_v30 = vadd.f32 %v306_v24, %v298_v3 }
  0x98   : > { %481 = vst [vmem:[#allocation1] ss:$2 sm:$0xff] %v2304_v1  ;;  %475 = vrot.lane.b32.xlu2 %v474_v18, %s2963_s9 }
  0x9a   : > { %v380_v32 = vpop.permute.xlu2 %379 }
  0x9b   : > { %v382_v52 = vsel %vm330_vm0, %v380_v32, 0.0  ;;  %v398_v32 = vsel %vm397_vm11, %v2304_v1, -inf  ;;  %vm605_vm11 = vcmask 1046528  }
  0x9f   : > { %v482_v20 = vld.sshfl [vmem:[#allocation1 + $0x8] sm:$0xff pattern:$0x75316420] }
  0xa0   : > { %489 = vst [vmem:[#allocation1] ss:$2 sm:$0xff] %v2304_v1  ;;  %v1986_v21 = vpack.i.bf16 %v482_v20, %v297_v19 }
  0xa2   : > { %1987 = vrot.lane.b32.xlu0 %v1986_v21, %s2180_s22 }
  0xa7   : > { %v490_v22 = vld.sshfl [vmem:[#allocation1 + $0x8] sm:$0xff pattern:$0x75316420] }
  0xa8   : > { %497 = vst [vmem:[#allocation1] ss:$2 sm:$0xff] %v2304_v1 }
  0xaa   : > { %v404_v34 = vpop.permute.xlu2 %403 }
  0xab   : > { %v406_v35 = vsel %vm330_vm0, %v404_v34, 0.0 }
  0xaf   : > { %v498_v23 = vld.sshfl [vmem:[#allocation1 + $0x8] sm:$0xff pattern:$0x75316420] }
  0xb0   : > { %505 = vst [vmem:[#allocation1] ss:$2 sm:$0xff] %v2304_v1 }
  0xb7   : > { %v506_v36 = vld.sshfl [vmem:[#allocation1 + $0x8] sm:$0xff pattern:$0x75316420] }
  0xb8   : > { %513 = vst [vmem:[#allocation1] ss:$2 sm:$0xff] %v2304_v1 }
  0xbf   : > { %v514_v37 = vld.sshfl [vmem:[#allocation1 + $0x8] sm:$0xff pattern:$0x75316420] }
  0xc0   : > { %521 = vst [vmem:[#allocation1] ss:$2 sm:$0xff] %v2304_v1 }
  0xc1   : > { %335 = vadd.xlane.f32.xlu2 %v334_v39 }
  0xc7   : > { %v522_v38 = vld.sshfl [vmem:[#allocation1 + $0x8] sm:$0xff pattern:$0x75316420] }
  0xc8   : > { %529 = vst [vmem:[#allocation1] ss:$2 sm:$0xff] %v2304_v1 }
  0xcc   : > { %332 = vmax.xlane.f32.xlu0 %v331_v25 }
  0xcf   : > { %v2395_v3 = vld.sshfl [vmem:[#allocation1 + $0x8] sm:$0xff pattern:$0x75316420] }
  0xd0   : > { %537 = vst [vmem:[#allocation1] ss:$2 sm:$0xff] %v2304_v1 }
  0xd2   : > { %v444_v49 = vpop.permute.xlu2 %443 }
  0xd3   : > { %v446_v50 = vsel %vm330_vm0, %v444_v49, 0.0 }
  0xe0   : > { %467 = vrot.lane.b32.xlu0 %v466_v17, %s2963_s9 }
  0xf2   : > { %v476_v57 = vpop.permute.xlu2 %475 }
  0xf3   : > { %v478_v24 = vsel %vm330_vm0, %v476_v57, 0.0 }
 0x10a   : > { %359 = vadd.xlane.f32.xlu0 %v358_v33 }
 0x112   : > { %407 = vadd.xlane.f32.xlu0 %v406_v35 }
 0x114   : > { %v2347_v26 = vpop.permute.xlu0 %1987 }
 0x115   : > { %v1989_v27 = vunpack.i.l.bf16 %v2347_v26 }
 0x117   : > { %v2350_v28 = vmax.f32 %v297_v19, %v1989_v27 }
 0x119   : > { %v1991_v29 = vpack.i.bf16 %v450_v15, %v2350_v28 }
 0x11b   : > { %1992 = vrot.lane.b32.xlu1 %v1991_v29, %s2181_s23 }
 0x123   : > { %315 = vrot.lane.b32.xlu1 %v2354_v30, %s2181_s23 }
 0x126   : > { %523 = vrot.lane.b32.xlu0 %v522_v38, %s2182_s29 }
 0x12b   : > { %343 = vrot.lane.b32.xlu1 %v342_v4, %s2961_s8 }
 0x133   : > { %367 = vrot.lane.b32.xlu1 %v366_v6, %s2963_s9  ;;  %v338_v6 = vsel %vm337_vm6, %v2304_v1, -inf  ;;  %vm598_vm6 = vcmask 130048   ;;  %s2971_s9 = smov 80  }
 0x134   : > { %v336_v59 = vpop.xlane.xlu2 %335 }
 0x13b   : > { %391 = vrot.lane.b32.xlu1 %v390_v8, %s2185_s13 }
 0x13f   : > { %v2387_v54 = vpop.xlane.xlu0 %332 }
 0x143   : > { %415 = vrot.lane.b32.xlu1 %v414_v10, %s2965_s14  ;;  %v538_v10 = vld.sshfl [vmem:[#allocation1 + $0x8] sm:$0xff pattern:$0x75316420] }
 0x14b   : > { %459 = vrot.lane.b32.xlu1 %v458_v16, %s2181_s23 }
 0x150   : > { %363 = vmax.xlane.f32.xlu0 %v362_v44 }
 0x152   : > { %v2391_v56 = vpop.permute.xlu0 %467 }
 0x158   : > { %375 = vmax.xlane.f32.xlu0 %v374_v47 }
 0x160   : > { %447 = vadd.xlane.f32.xlu0 %v446_v50 }
 0x17d   : > { %v360_v60 = vpop.xlane.xlu0 %359 }
 0x18d   : > { %v2372_v40 = vpop.permute.xlu1 %1992 }
 0x18e   : > { %v1994_v12 = vunpack.i.l.bf16 %v2372_v40  ;;  %v1995_v33 = vunpack.i.h.bf16 %v2372_v40 }
 0x190   : > { %v2406_v14 = vmax.f32 %v2350_v28, %v1994_v12  ;;  %v454_v34 = vsel %vm330_vm0, %v1995_v33, -inf }
 0x192   : > { %v1996_v16 = vpack.i.bf16 %v2326_v13, %v2406_v14  ;;  %v408_v13 = vpop.xlane.xlu0 %407 }
 0x195   : > { %v2374_v41 = vpop.permute.xlu1 %315 }
 0x196   : > { %v318_v19 = vadd.f32 %v2374_v41, %v2354_v30 }
 0x19a   : > { %v524_v28 = vpop.permute.xlu0 %523 }
 0x19b   : > { %v526_v29 = vsel %vm330_vm0, %v524_v28, 0.0 }
 0x19d   : > { %v344_v42 = vpop.permute.xlu1 %343 }
 0x19e   : > { %v346_v43 = vsel %vm330_vm0, %v344_v42, 0.0 }
 0x19f   : > { %347 = vadd.xlane.f32.xlu1 %v346_v43 }
 0x1a5   : > { %v368_v46 = vpop.permute.xlu1 %367 }
 0x1a6   : > { %v370_v48 = vsel %vm330_vm0, %v368_v46, 0.0 }
 0x1a7   : > { %431 = vadd.xlane.f32.xlu1 %v430_v45  ;;  %371 = vadd.xlane.f32.xlu2 %v370_v48 }
 0x1ad   : > { %v392_v51 = vpop.permute.xlu1 %391 }
 0x1ae   : > { %v394_v53 = vsel %vm330_vm0, %v392_v51, 0.0 }
 0x1b5   : > { %v416_v55 = vpop.permute.xlu1 %415 }
 0x1b6   : > { %v418_v8 = vsel %vm330_vm0, %v416_v55, 0.0 }
 0x1bd   : > { %v460_v58 = vpop.permute.xlu1 %459 }
 0x1be   : > { %v462_v9 = vsel %vm330_vm0, %v460_v58, 0.0  ;;  %v386_v58 = vsel %vm385_vm2, %v2304_v1, -inf  ;;  %vm571_vm2 = vcmask 113664  }
 0x1bf   : > { %499 = vrot.lane.b32.xlu2 %v498_v23, %s2185_s13 }
 0x1c0   : > { %491 = vrot.lane.b32.xlu1 %v490_v22, %s2180_s22 }
 0x1c3   : > { %v2424_v35 = vpop.xlane.xlu0 %363 }
 0x1cb   : > { %v2429_v42 = vpop.xlane.xlu0 %375 }
 0x1d3   : > { %v448_v47 = vpop.xlane.xlu0 %447 }
 0x1e8   : > { %383 = vadd.xlane.f32.xlu2 %v382_v52 }
 0x1ea   : > { %395 = vadd.xlane.f32.xlu1 %v394_v53 }
 0x200   : > { %507 = vrot.lane.b32.xlu2 %v506_v36, %s2185_s13 }
 0x203   : > { %515 = vrot.lane.b32.xlu1 %v514_v37, %s2182_s29 }
 0x212   : > { %v348_v61 = vpop.xlane.xlu1 %347 }
 0x213   : > { %v575_v62 = vsel %vm545_vm3, %v336_v59, %v348_v61  ;;  %v424_v59 = vsel %vm330_vm0, %v2320_v11, -inf  ;;  %v1990_v11 = vunpack.i.h.bf16 %v2347_v26 }
 0x214   : > { %v576_v63 = vsel %vm547_vm4, %v575_v62, %v360_v60  ;;  %v470_v62 = vsel %vm330_vm0, %v2391_v56, -inf }
 0x21a   : > { %v372_v4 = vpop.xlane.xlu2 %371  ;;  %v432_v15 = vpop.xlane.xlu1 %431 }
 0x21b   : > { %v577_v5 = vsel %vm549_vm5, %v576_v63, %v372_v4 }
 0x222   : > { %v500_v17 = vpop.permute.xlu2 %499 }
 0x223   : > { %v502_v36 = vsel %vm330_vm0, %v500_v17, -inf }
 0x229   : > { %339 = vmax.xlane.f32.xlu2 %v338_v6 }
 0x22d   : > { %351 = vmax.xlane.f32.xlu1 %v350_v7 }
 0x231   : > { %419 = vadd.xlane.f32.xlu2 %v418_v8 }
 0x232   : > { %v492_v18 = vpop.permute.xlu1 %491 }
 0x233   : > { %v494_v30 = vsel %vm330_vm0, %v492_v18, 0.0 }
 0x239   : > { %463 = vadd.xlane.f32.xlu2 %v462_v9 }
 0x246   : > { %539 = vrot.lane.b32.xlu1 %v538_v10, %s2965_s14 }
 0x251   : > { %1997 = vrot.lane.b32.xlu2 %v1996_v16, %s2961_s8 }
 0x259   : > { %325 = vrot.lane.b32.xlu2 %v318_v19, %s2961_s8  ;;  %s591_s8 = sld [smem:[#allocation2]] }
 0x25b   : > { %v384_v20 = vpop.xlane.xlu2 %383 }
 0x25c   : > { %v578_v21 = vsel %vm551_vm8, %v577_v5, %v384_v20 }
 0x25d   : > { %v396_v22 = vpop.xlane.xlu1 %395 }
 0x25e   : > { %v579_v23 = vsel %vm553_vm9, %v578_v21, %v396_v22  ;;  %v2187_v22 = vmov 0.0  }
 0x25f   : > { %v580_v44 = vsel %vm555_vm12, %v579_v23, %v408_v13  ;;  %v2459_v23 = vrot.slane %v2187_v22, 5 }
 0x263   : > { %v508_v25 = vpop.permute.xlu2 %507 }
 0x264   : > { %v510_v27 = vsel %vm330_vm0, %v508_v25, 0.0 }
 0x270   : > { %479 = vadd.xlane.f32.xlu1 %v478_v24 }
 0x275   : > { %v516_v37 = vpop.permute.xlu1 %515 }
 0x276   : > { %v518_v63 = vsel %vm330_vm0, %v516_v37, -inf }
 0x278   : > { %511 = vadd.xlane.f32.xlu1 %v510_v27 }
 0x280   : > { %527 = vadd.xlane.f32.xlu1 %v526_v29 }
 0x282   : > { %495 = vadd.xlane.f32.xlu2 %v494_v30 }
 0x288   : > { %411 = vmax.xlane.f32.xlu1 %v410_v31 }
 0x28a   : > { %399 = vmax.xlane.f32.xlu2 %v398_v32 }
 0x290   : > { %455 = vmax.xlane.f32.xlu1 %v454_v34 }
 0x298   : > { %503 = vmax.xlane.f32.xlu1 %v502_v36 }
 0x29c   : > { %v340_v38 = vpop.xlane.xlu2 %339 }
 0x29d   : > { %v546_v39 = vsel %vm545_vm3, %v2387_v54, %v340_v38  ;;  %vm565_vm3 = vcmask 89088  }
 0x2a0   : > { %v352_v41 = vpop.xlane.xlu1 %351 }
 0x2a1   : > { %v2432_v43 = vsel %vm547_vm4, %v546_v39, %v352_v41  ;;  %vm567_vm4 = vcmask 97280  }
 0x2a2   : > { %v550_v34 = vsel %vm549_vm5, %v2432_v43, %v2424_v35  ;;  %vm2969_vm5 = vcmask 80896  }
 0x2a3   : > { %v552_v36 = vsel %vm551_vm8, %v550_v34, %v2429_v42 }
 0x2a4   : > { %v420_v40 = vpop.xlane.xlu2 %419 }
 0x2a5   : > { %v581_v45 = vsel %vm557_vm13, %v580_v44, %v420_v40  ;;  %v2481_v44 = vrot.slane %v2187_v22, 6 }
 0x2a6   : > { %v582_v46 = vsel %vm559_vm14, %v581_v45, %v432_v15  ;;  %v1890_v45 = vld [vmem:[%s2953_s1 + $0x38] sm:$0xff] }
 0x2a7   : > { %v583_v49 = vsel %vm561_vm15, %v582_v46, %v448_v47  ;;  %v1896_v46 = vld [vmem:[%s2953_s1 + $0x68] sm:$0xff]  ;;  %762 = vmatpush.bf16.msra.mxu0 %v1890_v45  ;;  %v1889_v47 = vld [vmem:[%s2953_s1 + $0x30] sm:$0xff] }
 0x2a8   : > { %777 = vmatpush.bf16.msra.mxu1 %v1896_v46  ;;  %v1910_v46 = vld [vmem:[%s2954_s2 + $0x68] sm:$0xff] }
 0x2a9   : > { %1001 = vmatpush.bf16.msra.mxu3 %v1910_v46  ;;  %v898_v46 = vstv %s1798_s15 }
 0x2ab   : > { %763 = vmatpush.bf16.msra.mxu0 %v1889_v47  ;;  %v1903_v47 = vld [vmem:[%s2954_s2 + $0x30] sm:$0xff] }
 0x2ac   : > { %v464_v48 = vpop.xlane.xlu2 %463 }
 0x2ad   : > { %v584_v50 = vsel %vm2960_vm1, %v583_v49, %v464_v48  ;;  %vm573_vm1 = vcmask 121856   ;;  %v1895_v48 = vld [vmem:[%s2953_s1 + $0x60] sm:$0xff]  ;;  %v1888_v49 = vld [vmem:[%s2953_s1 + $0x28] sm:$0xff] }
 0x2ae   : > { %778 = vmatpush.bf16.msra.mxu1 %v1895_v48  ;;  %v1902_v48 = vld [vmem:[%s2954_s2 + $0x28] sm:$0xff] }
 0x2af   : > { %764 = vmatpush.bf16.msra.mxu0 %v1888_v49  ;;  %v1908_v49 = vld [vmem:[%s2954_s2 + $0x58] sm:$0xff] }
 0x2b4   : > { %v1998_v51 = vpop.permute.xlu2 %1997 }
 0x2b5   : > { %v2000_v4 = vunpack.i.h.bf16 %v1998_v51  ;;  %v1999_v9 = vunpack.i.l.bf16 %v1998_v51  ;;  %v1887_v51 = vld [vmem:[%s2953_s1 + $0x20] sm:$0xff] }
 0x2b6   : > { %765 = vmatpush.bf16.msra.mxu0 %v1887_v51  ;;  %v1900_v51 = vld [vmem:[%s2954_s2 + $0x18] sm:$0xff] }
 0x2b7   : > { %v438_v5 = vsel %vm330_vm0, %v2000_v4, -inf  ;;  %v323_v12 = vmax.f32 %v2406_v14, %v1999_v9 }
 0x2b8   : > { %v540_v52 = vpop.permute.xlu1 %539 }
 0x2b9   : > { %v542_v53 = vsel %vm330_vm0, %v540_v52, 0.0  ;;  %v1893_v52 = vld [vmem:[%s2953_s1 + $0x50] sm:$0xff] }
 0x2ba   : > { %543 = vadd.xlane.f32.xlu0 %v542_v53  ;;  %v1886_v53 = vld [vmem:[%s2953_s1 + $0x18] sm:$0xff] }
 0x2bb   : > { %766 = vmatpush.bf16.msra.mxu0 %v1886_v53  ;;  %v1898_v53 = vld [vmem:[%s2954_s2 + $0x8] sm:$0xff] }
 0x2bc   : > { %v326_v54 = vpop.permute.xlu2 %325 }
 0x2bd   : > { %v328_v55 = vadd.f32 %v326_v54, %v318_v19  ;;  %v1892_v54 = vld [vmem:[%s2953_s1 + $0x48] sm:$0xff] }
 0x2bf   : > { %v329_v57 = vmul.f32 0.0625, %v328_v55  ;;  %v1885_v55 = vld [vmem:[%s2953_s1 + $0x10] sm:$0xff] }
 0x2c0   : > { %767 = vmatpush.bf16.msra.mxu0 %v1885_v55  ;;  %v1897_v55 = vld [vmem:[%s2954_s2] sm:$0xff] }
 0x2c1   : > { %593 = vst [vmem:[#allocation1] ss:$2 sm:$0xff] %v329_v57 }
 0x2c2   : > { %387 = vmax.xlane.f32.xlu0 %v386_v58  ;;  %v1891_v58 = vld [vmem:[%s2953_s1 + $0x40] sm:$0xff] }
 0x2c8   : > { %v594_v60 = vld.sshfl [vmem:[#allocation1] sm:$0xff pattern:$0x75316420] }
 0x2c9   : > { %v2001_v61 = vpack.i.bf16 %v594_v60, %v2395_v3  ;;  %1051 = vst [vmem:[#allocation1] ss:$2 sm:$0xff] %v2304_v1  ;;  %v486_v3 = vsel %vm330_vm0, %v1990_v11, -inf  ;;  %v1884_v60 = vld [vmem:[%s2953_s1 + $0x8] sm:$0xff] }
 0x2ca   : > { %425 = vmax.xlane.f32.xlu0 %v424_v59  ;;  %768 = vmatpush.bf16.msra.mxu0 %v1884_v60 }
 0x2cb   : > { %2002 = vrot.lane.b32.xlu2 %v2001_v61, %s2965_s14 }
 0x2d2   : > { %471 = vmax.xlane.f32.xlu0 %v470_v62  ;;  %v1883_v62 = vld [vmem:[%s2953_s1] sm:$0xff] }
 0x2d3   : > { %769 = vmatpush.bf16.msra.mxu0 %v1883_v62 }
 0x2da   : > { %519 = vmax.xlane.f32.xlu0 %v518_v63 }
 0x2e3   : > { %v480_v7 = vpop.xlane.xlu1 %479 }
 0x2e4   : > { %v585_v15 = vsel %vm565_vm3, %v584_v50, %v480_v7  ;;  %v1894_v50 = vld [vmem:[%s2953_s1 + $0x58] sm:$0xff] }
 0x2e5   : > { %779 = vmatpush.bf16.msra.mxu1 %v1894_v50  ;;  %v1901_v50 = vld [vmem:[%s2954_s2 + $0x20] sm:$0xff] }
 0x2e9   : > { %780 = vmatpush.bf16.msra.mxu1 %v1893_v52  ;;  %v1899_v52 = vld [vmem:[%s2954_s2 + $0x10] sm:$0xff] }
 0x2eb   : > { %v512_v10 = vpop.xlane.xlu1 %511 }
 0x2ed   : > { %781 = vmatpush.bf16.msra.mxu1 %v1892_v54  ;;  %v1907_v54 = vld [vmem:[%s2954_s2 + $0x50] sm:$0xff] }
 0x2f1   : > { %782 = vmatpush.bf16.msra.mxu1 %v1891_v58  ;;  %v1905_v58 = vld [vmem:[%s2954_s2 + $0x40] sm:$0xff] }
 0x2f3   : > { %v528_v24 = vpop.xlane.xlu1 %527 }
 0x2f4   : > { %439 = vmax.xlane.f32.xlu2 %v438_v5 }
 0x2f5   : > { %v496_v6 = vpop.xlane.xlu2 %495 }
 0x2f6   : > { %v586_v26 = vsel %vm567_vm4, %v585_v15, %v496_v6 }
 0x2f7   : > { %v587_v21 = vsel %vm569_vm7, %v586_v26, %v512_v10 }
 0x2f8   : > { %v588_v27 = vsel %vm571_vm2, %v587_v21, %v528_v24 }
 0x2fb   : > { %v412_v57 = vpop.xlane.xlu1 %411 }
 0x2fc   : > { %487 = vmax.xlane.f32.xlu2 %v486_v3 }
 0x2fd   : > { %v400_v8 = vpop.xlane.xlu2 %399 }
 0x303   : > { %v456_v63 = vpop.xlane.xlu1 %455 }
 0x325   : > { %v2003_v56 = vpop.permute.xlu2 %2002 }
 0x326   : > { %v2005_v16 = vunpack.i.h.bf16 %v2003_v56  ;;  %v2004_v17 = vunpack.i.l.bf16 %v2003_v56 }
 0x328   : > { %v599_v18 = vsel %vm598_vm6, %v323_v12, %v2005_v16  ;;  %v534_v19 = vsel %vm330_vm0, %v2004_v17, -inf  ;;  %vm629_vm0 = vcmask 1041408  }
 0x329   : > { %v601_v20 = vrot.slane %v599_v18, 5  ;;  %535 = vmax.xlane.f32.xlu2 %v534_v19 }
 0x32b   : > { %v604_v14 = vsel %vm603_vm10, 0.0, %v601_v20 }
 0x32c   : > { %v2462_v13 = vsel %vm605_vm11, %v604_v14, 0.0 }
 0x32d   : > { %v544_v25 = vpop.xlane.xlu0 %543  ;;  %v608_v28 = vrot.slane %v2462_v13, 1  ;;  %v623_v29 = vrot.slane %v2462_v13, 5  ;;  %v616_v41 = vrot.slane %v2462_v13, 3  ;;  %v630_v40 = vrot.slane %v2462_v13, 6 }
 0x32e   : > { %v589_v30 = vsel %vm573_vm1, %v588_v27, %v544_v25  ;;  %v612_v35 = vrot.slane %v2462_v13, 2  ;;  %v620_v20 = vrot.slane %v2462_v13, 4 }
 0x32f   : > { %v590_v31 = vmul.f32 0.0625, %v589_v30  ;;  %v625_v32 = vsel %vm603_vm10, %v623_v29, %v2459_v23  ;;  %v632_v43 = vsel %vm629_vm0, %v630_v40, %v2481_v44 }
 0x330   : > { %v2006_v33 = vpack.i.bf16 %v625_v32, %v608_v28  ;;  %v2011_v42 = vpack.i.bf16 %v632_v43, %v612_v35 }
 0x331   : > { %829 = vrot.lane.b32.xlu1 %v590_v31, %s2965_s14  ;;  %s2972_s14 = smov 112  }
 0x332   : > { %2007 = vrot.lane.b32.xlu0 %v2006_v33, %s2182_s29 }
 0x335   : > { %v388_v37 = vpop.xlane.xlu0 %387 }
 0x336   : > { %v554_v38 = vsel %vm553_vm9, %v552_v36, %v388_v37  ;;  %vm636_vm9 = vcmask 261120  }
 0x337   : > { %v556_v39 = vsel %vm555_vm12, %v554_v38, %v400_v8  ;;  %v504_v8 = vpop.xlane.xlu1 %503  ;;  %vm638_vm12 = vcmask 523264  }
 0x338   : > { %v558_v5 = vsel %vm557_vm13, %v556_v39, %v412_v57  ;;  %vm640_vm13 = vcmask 785408   ;;  %v1906_v57 = vld [vmem:[%s2954_s2 + $0x48] sm:$0xff] }
 0x33a   : > { %617 = vrot.lane.b32.xlu0 %v616_v41, %s2181_s23 }
 0x33d   : > { %v426_v59 = vpop.xlane.xlu0 %425 }
 0x33e   : > { %v560_v11 = vsel %vm559_vm14, %v558_v5, %v426_v59 }
 0x341   : > { %2012 = vrot.lane.b32.xlu2 %v2011_v42, %s2180_s22 }
 0x345   : > { %v472_v4 = vpop.xlane.xlu0 %471 }
 0x34d   : > { %v520_v10 = vpop.xlane.xlu0 %519 }
 0x367   : > { %v440_v61 = vpop.xlane.xlu2 %439 }
 0x368   : > { %v562_v6 = vsel %vm561_vm15, %v560_v11, %v440_v61 }
 0x369   : > { %v564_v7 = vsel %vm2969_vm5, %v562_v6, %v456_v63 }
 0x36a   : > { %v566_v9 = vsel %vm565_vm3, %v564_v7, %v472_v4 }
 0x36f   : > { %v488_v3 = vpop.xlane.xlu2 %487 }
 0x370   : > { %v568_v56 = vsel %vm567_vm4, %v566_v9, %v488_v3 }
 0x371   : > { %v570_v15 = vsel %vm569_vm7, %v568_v56, %v504_v8 }
 0x372   : > { %v572_v16 = vsel %vm571_vm2, %v570_v15, %v520_v10 }
 0x39c   : > { %v536_v12 = vpop.xlane.xlu2 %535 }
 0x39d   : > { %v574_v17 = vsel %vm573_vm1, %v572_v16, %v536_v12  ;;  %v674_v12 = vstv %s591_s8  ;;  %s283_s8 = sand.u32 1, %s2169_s25  }
 0x3a3   : > { %v830_v26 = vpop.permute.xlu1 %829 }
 0x3a4   : > { %v832_v18 = vsel %vm598_vm6, %v574_v17, %v830_v26  ;;  %v2013_v19 = vpop.permute.xlu2 %2012  ;;  %v2008_v21 = vpop.permute.xlu0 %2007 }
 0x3a5   : > { %v834_v14 = vrot.slane %v832_v18, 5  ;;  %v2015_v22 = vunpack.i.h.bf16 %v2013_v19  ;;  %v2010_v24 = vunpack.i.h.bf16 %v2008_v21  ;;  %v2009_v25 = vunpack.i.l.bf16 %v2008_v21 }
 0x3a6   : > { %v2014_v30 = vunpack.i.l.bf16 %v2013_v19 }
 0x3a7   : > { %v836_v27 = vsel %vm603_vm10, 0.0, %v834_v14  ;;  %v642_v28 = vsel %vm636_vm9, %v620_v20, %v2010_v24  ;;  %v637_v32 = vsel %vm636_vm9, %v2462_v13, %v2009_v25 }
 0x3a8   : > { %v2544_v29 = vsel %vm605_vm11, %v836_v27, 0.0  ;;  %v643_v31 = vsel %vm638_vm12, %v642_v28, %v2015_v22  ;;  %v639_v13 = vsel %vm638_vm12, %v637_v32, %v2014_v30 }
 0x3a9   : > { %v847_v33 = vrot.slane %v2544_v29, 3  ;;  %v843_v34 = vrot.slane %v2544_v29, 2  ;;  %v645_v36 = vpack.c.bf16 %v643_v31, %v643_v31  ;;  %v839_v37 = vrot.slane %v2544_v29, 1 }
 0x3aa   : > { %v853_v38 = vrot.slane %v2544_v29, 5  ;;  %v858_v42 = vrot.slane %v2544_v29, 6  ;;  %v851_v3 = vrot.slane %v2544_v29, 4 }
 0x3ab   : > { %848 = vrot.lane.b32.xlu2 %v847_v33, %s2181_s23  ;;  %844 = vrot.lane.b32.xlu0 %v843_v34, %s2180_s22 }
 0x3ac   : > { %1795 = vmatmul.msk.bf16.vlgmr.msra.gmra.mxu1 %vm640_vm13, %v645_v36  ;;  %v618_v39 = vpop.permute.xlu0 %617  ;;  %v854_v41 = vsel %vm603_vm10, %v853_v38, %v2459_v23  ;;  %v859_v45 = vsel %vm629_vm0, %v858_v42, %v2481_v44  ;;  %v1904_v23 = vld [vmem:[%s2954_s2 + $0x38] sm:$0xff]  ;;  %v1909_v44 = vld [vmem:[%s2954_s2 + $0x60] sm:$0xff] }
 0x3ad   : > { %v2016_v40 = vpack.i.bf16 %v854_v41, %v839_v37  ;;  %v641_v35 = vsel %vm640_vm13, %v639_v13, %v618_v39  ;;  %986 = vmatpush.bf16.msra.mxu2 %v1904_v23  ;;  %1002 = vmatpush.bf16.msra.mxu3 %v1909_v44 }
 0x3ae   : > { %v644_v43 = vpack.c.bf16 %v641_v35, %v641_v35 }
 0x3af   : > { %2017 = vrot.lane.b32.xlu1 %v2016_v40, %s2182_s29 }
 0x3b0   : > { %770 = vmatmul.bf16.vlgmr.msra.gmra.mxu0 %v644_v43 }
 0x3b1   : > { %987 = vmatpush.bf16.msra.mxu2 %v1903_v47  ;;  %1003 = vmatpush.bf16.msra.mxu3 %v1908_v49 }
 0x3b5   : > { %988 = vmatpush.bf16.msra.mxu2 %v1902_v48  ;;  %1004 = vmatpush.bf16.msra.mxu3 %v1907_v54 }
 0x3b7   : > { %860 = vrot.lane.b32.xlu1 %v859_v45, %s2180_s22 }
 0x3b9   : > { %989 = vmatpush.bf16.msra.mxu2 %v1901_v50  ;;  %1005 = vmatpush.bf16.msra.mxu3 %v1906_v57 }
 0x3bd   : > { %990 = vmatpush.bf16.msra.mxu2 %v1900_v51  ;;  %1006 = vmatpush.bf16.msra.mxu3 %v1905_v58 }
 0x3c1   : > { %991 = vmatpush.bf16.msra.mxu2 %v1899_v52 }
 0x3c5   : > { %992 = vmatpush.bf16.msra.mxu2 %v1898_v53 }
 0x3c9   : > { %993 = vmatpush.bf16.msra.mxu2 %v1897_v55 }
 0x405   : > { %v849_v63 = vpop.permute.xlu2 %848 }
 0x41d   : > { %v845_v61 = vpop.permute.xlu0 %844 }
 0x421   : > { %v2018_v59 = vpop.permute.xlu1 %2017 }
 0x422   : > { %v2019_v60 = vunpack.i.l.bf16 %v2018_v59  ;;  %v2020_v4 = vunpack.i.h.bf16 %v2018_v59 }
 0x424   : > { %v863_v62 = vsel %vm636_vm9, %v2544_v29, %v2019_v60  ;;  %v866_v8 = vsel %vm636_vm9, %v851_v3, %v2020_v4 }
 0x425   : > { %v864_v5 = vsel %vm638_vm12, %v863_v62, %v845_v61 }
 0x426   : > { %v865_v11 = vsel %vm640_vm13, %v864_v5, %v849_v63  ;;  %v2188_v5 = vmov 2  }
 0x427   : > { %v868_v6 = vpack.c.bf16 %v865_v11, %v865_v11  ;;  %2023 = vset.pattern.permute.xlu0 %v2188_v5  ;;  %v2189_v11 = vmov 1   ;;  %v2193_v5 = vmov 12  }
 0x428   : > { %2022 = vset.pattern.permute.xlu1 %v2189_v11 }
 0x429   : > { %v861_v7 = vpop.permute.xlu1 %860  ;;  %v784_v9 = vpop.f32.mrf.mxu1  ;;  %994 = vmatmul.bf16.vlgmr.msra.gmra.mxu2 %v868_v6  ;;  %v2190_v6 = vmov 0  }
 0x42a   : > { %v867_v10 = vsel %vm638_vm12, %v866_v8, %v861_v7  ;;  %2021 = vset.pattern.permute.xlu2 %v2190_v6  ;;  %v2637_v7 = vld.sshfl [vmem:[#allocation1] sm:$0xff pattern:$0x75316420]  ;;  %v1053_v8 = vld.sshfl [vmem:[#allocation1 + $0x8] sm:$0xff pattern:$0x75316420] }
 0x42b   : > { %v869_v56 = vpack.c.bf16 %v867_v10, %v867_v10  ;;  %1071 = vst [vmem:[#allocation1] ss:$2 sm:$0xff] %v2304_v1 }
 0x42d   : > { %1855 = vmatmul.msk.bf16.vlgmr.msra.gmra.mxu3 %vm640_vm13, %v869_v56  ;;  %v771_v15 = vpop.f32.mrf.mxu0 }
 0x42e   : > { %v772_v16 = vadd.f32 %v771_v15, %v674_v12 }
 0x430   : > { %v785_v17 = vadd.f32 %v784_v9, %v772_v16 }
 0x431   : > { %v786_v26 = vpop.f32.mrf.mxu1 }
 0x432   : > { %v1796_v18 = vmul.f32 -1.442695, %v785_v17 }
 0x434   : > { %2040 = vpow2.f32 %v1796_v18 }
 0x435   : > { %v773_v19 = vpop.f32.mrf.mxu0 }
 0x43a   : > { %v2041_v20 = vpop.eup %2040 }
 0x43b   : > { %v791_v21 = vadd.f32 1.0, %v2041_v20 }
 0x43d   : > { %2042 = vrcp.f32 %v791_v21  ;;  %v803_v25 = vand.u32 2147483648, %v791_v21  ;;  %v801_v28 = vand.u32 2147483647, %v791_v21  ;;  %vm797_vm15 = vweird.f32 %v791_v21 }
 0x43f   : > { %v804_v30 = vor.u32 1.1754944e-38, %v803_v25  ;;  %vm802_vm3 = vcmp.eq.f32.partialorder %v801_v28, 8.507059e+37 }
 0x443   : > { %v2043_v14 = vpop.eup %2042 }
 0x444   : > { %v793_v22 = vmul.f32 %v2043_v14, %v791_v21  ;;  %vm798_vm14 = vweird.f32 %v2043_v14 }
 0x445   : > { %vm799_vm1 = vmor %vm797_vm15, %vm798_vm14 }
 0x446   : > { %v794_v24 = vsub.f32 1.0, %v793_v22 }
 0x448   : > { %v795_v27 = vmul.f32 %v2043_v14, %v794_v24  ;;  %v1093_v24 = vstv %s2641_s16 }
 0x44a   : > { %v796_v29 = vadd.f32 %v2043_v14, %v795_v27 }
 0x44c   : > { %v800_v31 = vsel %vm799_vm1, %v2043_v14, %v796_v29  ;;  %vm1056_vm1 = vcmask 1043456  }
 0x44d   : > { %v805_v32 = vsel %vm802_vm3, %v804_v30, %v800_v31  ;;  %v1064_v10 = vsel %vm1056_vm1, %v1053_v8, -inf  ;;  %vm1208_vm3 = vcmask 392192  }
 0x44e   : > { %v807_v33 = vmul.f32 %v805_v32, %v785_v17  ;;  %v1065_v12 = vrot.slane %v1064_v10, 4  ;;  %v1073_v17 = vld.sshfl [vmem:[#allocation1 + $0x8] sm:$0xff pattern:$0x75316420] }
 0x44f   : > { %v1083_v18 = vsel %vm1056_vm1, %v1073_v17, 0.0  ;;  %v2196_v17 = vmov 4  }
 0x450   : > { %v1797_v34 = vmul.f32 -1.442695, %v807_v33  ;;  %v1066_v15 = vmax.f32 %v1064_v10, %v1065_v12  ;;  %v1084_v19 = vrot.slane %v1083_v18, 4 }
 0x452   : > { %2044 = vpow2.f32 %v1797_v34  ;;  %v1067_v16 = vrot.slane %v1066_v15, 2  ;;  %v1085_v22 = vadd.f32 %v1084_v19, %v1083_v18  ;;  %v2198_v18 = vmov 5  }
 0x453   : > { %v2199_v19 = vmov 14  }
 0x454   : > { %v1068_v26 = vmax.f32 %v1066_v15, %v1067_v16  ;;  %v1086_v27 = vrot.slane %v1085_v22, 2  ;;  %v2195_v16 = vmov 15  }
 0x456   : > { %v1069_v21 = vrot.slane %v1068_v26, 1  ;;  %v1087_v30 = vadd.f32 %v1086_v27, %v1085_v22  ;;  %v2203_v22 = vmov 8  }
 0x458   : > { %v2045_v36 = vpop.eup %2044  ;;  %v1070_v25 = vmax.f32 %v1068_v26, %v1069_v21  ;;  %v1088_v32 = vrot.slane %v1087_v30, 1  ;;  %v2197_v26 = vmov 13   ;;  %v2201_v21 = vmov 3  }
 0x459   : > { %v811_v37 = vadd.f32 1.0, %v2045_v36 }
 0x45a   : > { %v1095_v28 = vmul.f32 %v1093_v24, %v1070_v25 }
 0x45b   : > { %2046 = vrcp.f32 %v811_v37  ;;  %v823_v13 = vand.u32 2147483648, %v811_v37  ;;  %v821_v35 = vand.u32 2147483647, %v811_v37  ;;  %vm817_vm7 = vweird.f32 %v811_v37 }
 0x45d   : > { %v824_v42 = vor.u32 1.1754944e-38, %v823_v13  ;;  %vm822_vm11 = vcmp.eq.f32.partialorder %v821_v35, 8.507059e+37 }
 0x461   : > { %v2047_v38 = vpop.eup %2046 }
 0x462   : > { %v813_v39 = vmul.f32 %v2047_v38, %v811_v37  ;;  %vm818_vm4 = vweird.f32 %v2047_v38  ;;  %v1089_v37 = vadd.f32 %v1088_v32, %v1087_v30 }
 0x463   : > { %vm819_vm10 = vmor %vm817_vm7, %vm818_vm4  ;;  %vm1211_vm7 = vcmask 654336  }
 0x464   : > { %v814_v41 = vsub.f32 1.0, %v813_v39  ;;  %v1097_v39 = vstv %s2645_s17 }
 0x466   : > { %v815_v40 = vmul.f32 %v2047_v38, %v814_v41 }
 0x468   : > { %v816_v43 = vadd.f32 %v2047_v38, %v815_v40  ;;  %v1091_v40 = vmul.f32 0.25, %v1089_v37 }
 0x46a   : > { %v820_v45 = vsel %vm819_vm10, %v2047_v38, %v816_v43 }
 0x46b   : > { %v2615_v23 = vsel %vm822_vm11, %v824_v42, %v820_v45 }
 0x46c   : > { %1191 = vrot.lane.b32.xlu1 %v2615_v23, %s2185_s13  ;;  %1188 = vrot.lane.b32.xlu2 %v2615_v23, %s2182_s29 }
 0x46d   : > { %1185 = vrot.lane.b32.xlu0 %v2615_v23, %s2970_s21 }
 0x474   : > { %1200 = vrot.lane.b32.xlu1 %v2615_v23, %s2181_s23  ;;  %1197 = vrot.lane.b32.xlu2 %v2615_v23, %s2971_s9 }
 0x475   : > { %1194 = vrot.lane.b32.xlu0 %v2615_v23, %s2180_s22 }
 0x47c   : > { %1279 = vrot.lane.b32.xlu2 %v2304_v1, %s2972_s14 }
 0x47d   : > { %1203 = vrot.lane.b32.xlu0 %v2615_v23, %s2972_s14 }
 0x484   : > { %1288 = vrot.lane.b32.xlu2 %v2304_v1, %s2181_s23 }
 0x4ac   : > { %v995_v47 = vpop.f32.mrf.mxu2 }
 0x4ad   : > { %v996_v44 = vadd.f32 %v995_v47, %v898_v46  ;;  %v1099_v46 = vmul.f32 %v1097_v39, %v1091_v40 }
 0x4b0   : > { %v1008_v48 = vpop.f32.mrf.mxu3 }
 0x4b1   : > { %v1009_v49 = vadd.f32 %v1008_v48, %v996_v44  ;;  %v2657_v48 = vadd.f32 %v1099_v46, %v1095_v28 }
 0x4b3   : > { %v1856_v50 = vmul.f32 -1.442695, %v1009_v49 }
 0x4b4   : > { %v997_v51 = vpop.f32.mrf.mxu2 }
 0x4b5   : > { %2048 = vpow2.f32 %v1856_v50 }
 0x4b8   : > { %v1010_v52 = vpop.f32.mrf.mxu3 }
 0x4bb   : > { %v2049_v53 = vpop.eup %2048 }
 0x4bc   : > { %v1015_v54 = vadd.f32 1.0, %v2049_v53 }
 0x4be   : > { %2050 = vrcp.f32 %v1015_v54  ;;  %v1027_v59 = vand.u32 2147483648, %v1015_v54  ;;  %v1025_v61 = vand.u32 2147483647, %v1015_v54  ;;  %vm1021_vm5 = vweird.f32 %v1015_v54 }
 0x4c0   : > { %v1028_v63 = vor.u32 1.1754944e-38, %v1027_v59  ;;  %vm1026_vm15 = vcmp.eq.f32.partialorder %v1025_v61, 8.507059e+37 }
 0x4c4   : > { %v2051_v55 = vpop.eup %2050 }
 0x4c5   : > { %v1017_v57 = vmul.f32 %v2051_v55, %v1015_v54  ;;  %vm1022_vm2 = vweird.f32 %v2051_v55 }
 0x4c6   : > { %vm1023_vm14 = vmor %vm1021_vm5, %vm1022_vm2  ;;  %v1189_v31 = vpop.permute.xlu2 %1188  ;;  %vm1214_vm5 = vcmask 916480  }
 0x4c7   : > { %v1018_v58 = vsub.f32 1.0, %v1017_v57 }
 0x4c9   : > { %v1019_v60 = vmul.f32 %v2051_v55, %v1018_v58 }
 0x4cb   : > { %v1020_v62 = vadd.f32 %v2051_v55, %v1019_v60  ;;  %v2667_v60 = vld.sshfl [vmem:[#allocation1] sm:$0xff pattern:$0x75316420] }
 0x4cd   : > { %v1024_v4 = vsel %vm1023_vm14, %v2051_v55, %v1020_v62 }
 0x4ce   : > { %v1029_v3 = vsel %vm1026_vm15, %v1028_v63, %v1024_v4  ;;  %v1198_v51 = vpop.permute.xlu2 %1197  ;;  %v2191_v63 = vmov 9   ;;  %v2192_v4 = vmov 11  }
 0x4cf   : > { %v1031_v9 = vmul.f32 %v1029_v3, %v1009_v49 }
 0x4d1   : > { %v1857_v56 = vmul.f32 -1.442695, %v1031_v9  ;;  %v2194_v9 = vmov 10  }
 0x4d3   : > { %2052 = vpow2.f32 %v1857_v56 }
 0x4d6   : > { %v1280_v25 = vpop.permute.xlu2 %1279 }
 0x4d7   : > { %v1281_v30 = vrot.slane %v1280_v25, 4 }
 0x4d9   : > { %v2053_v20 = vpop.eup %2052 }
 0x4da   : > { %v1035_v14 = vadd.f32 1.0, %v2053_v20  ;;  %v2200_v20 = vmov 7  }
 0x4dc   : > { %2054 = vrcp.f32 %v1035_v14  ;;  %v1047_v35 = vand.u32 2147483648, %v1035_v14  ;;  %v1045_v42 = vand.u32 2147483647, %v1035_v14  ;;  %vm1041_vm10 = vweird.f32 %v1035_v14 }
 0x4de   : > { %v1192_v38 = vpop.permute.xlu1 %1191  ;;  %v1048_v49 = vor.u32 1.1754944e-38, %v1047_v35  ;;  %vm1046_vm2 = vcmp.eq.f32.partialorder %v1045_v42, 8.507059e+37  ;;  %v1289_v27 = vpop.permute.xlu2 %1288 }
 0x4df   : > { %v1186_v29 = vpop.permute.xlu0 %1185 }
 0x4e0   : > { %v1206_v34 = vsel %vm598_vm6, %v2615_v23, %v1186_v29 }
 0x4e1   : > { %v1207_v13 = vsel %vm636_vm9, %v1206_v34, %v1189_v31 }
 0x4e2   : > { %v2055_v33 = vpop.eup %2054  ;;  %v1209_v47 = vsel %vm1208_vm3, %v1207_v13, %v1192_v38 }
 0x4e3   : > { %v1037_v36 = vmul.f32 %v2055_v33, %v1035_v14  ;;  %vm1042_vm4 = vweird.f32 %v2055_v33  ;;  %v2202_v14 = vmov 6  }
 0x4e4   : > { %vm1043_vm11 = vmor %vm1041_vm10, %vm1042_vm4 }
 0x4e5   : > { %v1038_v41 = vsub.f32 1.0, %v1037_v36  ;;  %v1290_v36 = vrot.slane %v1289_v27, 4 }
 0x4e6   : > { %v1201_v54 = vpop.permute.xlu1 %1200 }
 0x4e7   : > { %v1039_v43 = vmul.f32 %v2055_v33, %v1038_v41  ;;  %v1195_v45 = vpop.permute.xlu0 %1194 }
 0x4e8   : > { %v1210_v44 = vsel %vm638_vm12, %v1209_v47, %v1195_v45 }
 0x4e9   : > { %v1040_v23 = vadd.f32 %v2055_v33, %v1039_v43  ;;  %v1212_v53 = vsel %vm1211_vm7, %v1210_v44, %v1198_v51 }
 0x4ea   : > { %v1213_v55 = vsel %vm640_vm13, %v1212_v53, %v1201_v54 }
 0x4eb   : > { %v1044_v50 = vsel %vm1043_vm11, %v2055_v33, %v1040_v23 }
 0x4ec   : > { %v2659_v52 = vsel %vm1046_vm2, %v1048_v49, %v1044_v50 }
 0x4ed   : > { %1236 = vperm.xlu1 %2022, %v2659_v52   ;;  %1231 = vperm.xlu2 %2021, %v2659_v52  }
 0x4ee   : > { %1241 = vperm.xlu0 %2023, %v2659_v52  }
 0x4ef   : > { %v1204_v57 = vpop.permute.xlu0 %1203 }
 0x4f0   : > { %v1215_v58 = vsel %vm1214_vm5, %v1213_v55, %v1204_v57 }
 0x4f1   : > { %v1217_v59 = vrot.slane %v1215_v58, 4 }
 0x4f3   : > { %v1218_v61 = vsel %vm1056_vm1, %v1215_v58, %v1217_v59 }
 0x4f4   : > { %v1220_v62 = vmul.f32 %v1218_v61, %v2304_v1 }
 0x4f5   : > { %2024 = vset.pattern.permute.xlu1 %v2191_v63  ;;  %2026 = vset.pattern.permute.xlu2 %v2192_v4 }
 0x4f6   : > { %1222 = vst [vmem:[#allocation1] ss:$2 sm:$0xff] %v1220_v62  ;;  %1297 = vrot.lane.b32.xlu0 %v2304_v1, %s2971_s9  ;;  %1276 = vperm.xlu1 %2024, %v2659_v52  }
 0x4f7   : > { %1294 = vperm.xlu2 %2026, %v2659_v52   ;;  %2027 = vset.pattern.permute.xlu0 %v2193_v5 }
 0x4fd   : > { %v1223_v3 = vld.sshfl [vmem:[#allocation1] sm:$0xff pattern:$0x75316420]  ;;  %v1224_v8 = vld.sshfl [vmem:[#allocation1 + $0x8] sm:$0xff pattern:$0x75316420] }
 0x4fe   : > { %1303 = vperm.xlu0 %2027, %v2659_v52   ;;  %2025 = vset.pattern.permute.xlu1 %v2194_v9  ;;  %v1227_v10 = vpack.c.bf16 %v1223_v3, %v1223_v3  ;;  %v1228_v56 = vpack.c.bf16 %v1224_v8, %v1224_v8 }
 0x4ff   : > { %1315 = vrot.lane.b32.xlu2 %v2304_v1, %s2185_s13  ;;  %1285 = vperm.xlu1 %2025, %v2659_v52  }
 0x500   : > { %v1407_v12 = vsel %vm629_vm0, %v1227_v10, 0  ;;  %v1410_v15 = vsel %vm629_vm0, %v1228_v56, 0  ;;  %2030 = vset.pattern.permute.xlu2 %v2195_v16 }
 0x501   : > { %1419 = vmatpush.bf16.msrb.mxu1 %v1407_v12  ;;  %1432 = vmatpush.bf16.msrb.mxu3 %v1410_v15 }
 0x506   : > { %1333 = vrot.lane.b32.xlu0 %v2304_v1, %s2970_s21 }
 0x507   : > { %1324 = vrot.lane.b32.xlu2 %v2304_v1, %s2182_s29  ;;  %1306 = vrot.lane.b32.xlu1 %v2304_v1, %s2180_s22 }
 0x508   : > { %2032 = vset.pattern.permute.xlu0 %v2196_v17  ;;  %2028 = vset.pattern.permute.xlu1 %v2197_v26 }
 0x50e   : > { %1251 = vperm.xlu0 %2032, %v2659_v52  }
 0x50f   : > { %1330 = vperm.xlu2 %2030, %v2659_v52   ;;  %1312 = vperm.xlu1 %2028, %v2659_v52  }
 0x516   : > { %2039 = vset.pattern.permute.xlu0 %v2189_v11 }
 0x517   : > { %2033 = vset.pattern.permute.xlu2 %v2198_v18  ;;  %2029 = vset.pattern.permute.xlu1 %v2199_v19 }
 0x518   : > { %1256 = vperm.xlu2 %2033, %v2659_v52   ;;  %1321 = vperm.xlu1 %2029, %v2659_v52  }
 0x520   : > { %2035 = vset.pattern.permute.xlu2 %v2200_v20  ;;  %2031 = vset.pattern.permute.xlu1 %v2201_v21 }
 0x521   : > { %1266 = vperm.xlu2 %2035, %v2659_v52   ;;  %1246 = vperm.xlu1 %2031, %v2659_v52  }
 0x529   : > { %2034 = vset.pattern.permute.xlu1 %v2202_v14  ;;  %2037 = vset.pattern.permute.xlu2 %v2190_v6 }
 0x52a   : > { %1261 = vperm.xlu1 %2034, %v2659_v52  }
 0x532   : > { %2036 = vset.pattern.permute.xlu1 %v2203_v22 }
 0x533   : > { %1271 = vperm.xlu1 %2036, %v2659_v52  }
 0x53b   : > { %2038 = vset.pattern.permute.xlu1 %v2189_v11 }
 0x547   : > { %v1232_v28 = vpop.permute.xlu2 %1231 }
 0x548   : > { %v1234_v59 = vmul.f32 %v1232_v28, %v2304_v1 }
 0x551   : > { %v1295_v32 = vpop.permute.xlu2 %1294 }
 0x559   : > { %v1316_v41 = vpop.permute.xlu2 %1315 }
 0x55a   : > { %v1317_v49 = vrot.slane %v1316_v41, 4 }
 0x55f   : > { %v1237_v29 = vpop.permute.xlu1 %1236 }
 0x560   : > { %v1242_v33 = vpop.permute.xlu0 %1241  ;;  %v1239_v57 = vmul.f32 %v1237_v29, %v2304_v1 }
 0x561   : > { %v1325_v42 = vpop.permute.xlu2 %1324  ;;  %v1244_v62 = vmul.f32 %v1242_v33, %v2304_v1  ;;  %v1396_v33 = vld [vmem:[%s2955_s3] sm:$0xf] }
 0x562   : > { %v1326_v55 = vrot.slane %v1325_v42, 4  ;;  %v1380_v5 = vsel %vm598_vm6, %v1234_v59, %v1239_v57  ;;  %1866 = vmatmul.msk.bf16.vlgmr.msrb.gmra.mxu3 %vm551_vm8, %v1396_v33  ;;  %1865 = vmatmul.msk.bf16.vlgmr.msrb.gmra.mxu1 %vm551_vm8, %v1396_v33 }
 0x563   : > { %v1381_v10 = vsel %vm636_vm9, %v1380_v5, %v1244_v62 }
 0x568   : > { %v1277_v31 = vpop.permute.xlu1 %1276  ;;  %v1298_v13 = vpop.permute.xlu0 %1297 }
 0x569   : > { %v1283_v34 = vmul.f32 %v1281_v30, %v1277_v31  ;;  %v1299_v11 = vrot.slane %v1298_v13, 4  ;;  %v1331_v50 = vpop.permute.xlu2 %1330 }
 0x56b   : > { %1339 = vst [vmem:[#allocation1] ss:$2 sm:$0xff] %v1283_v34  ;;  %v1301_v35 = vmul.f32 %v1299_v11, %v1295_v32  ;;  %v1397_v34 = vld [vmem:[%s2957_s5] sm:$0xff] }
 0x570   : > { %v1304_v46 = vpop.permute.xlu0 %1303 }
 0x571   : > { %v1286_v6 = vpop.permute.xlu1 %1285 }
 0x572   : > { %v1292_v37 = vmul.f32 %v1290_v36, %v1286_v6  ;;  %v1340_v38 = vld.sshfl [vmem:[#allocation1] sm:$0xff pattern:$0x75316420]  ;;  %v1257_v58 = vpop.permute.xlu2 %1256 }
 0x573   : > { %1341 = vrot.lane.b32.xlu0 %v1340_v38, %s2970_s21  ;;  %v1259_v18 = vmul.f32 %v1257_v58, %v2304_v1  ;;  %s1736_s21 = sshll.u32 %s283_s8, 4 }
 0x574   : > { %1345 = vst [vmem:[#allocation1] ss:$2 sm:$0xff] %v1292_v37  ;;  %v1076_v37 = vsel %vm1056_vm1, %v2667_v60, 0.0 }
 0x575   : > { %v1077_v11 = vrot.slane %v1076_v37, 4 }
 0x578   : > { %v1334_v54 = vpop.permute.xlu0 %1333 }
 0x579   : > { %v1307_v40 = vpop.permute.xlu1 %1306  ;;  %v1335_v8 = vrot.slane %v1334_v54, 4 }
 0x57a   : > { %v1308_v45 = vrot.slane %v1307_v40, 4 }
 0x57b   : > { %v1346_v43 = vld.sshfl [vmem:[#allocation1] sm:$0xff pattern:$0x75316420]  ;;  %v1337_v15 = vmul.f32 %v1335_v8, %v1331_v50  ;;  %v1267_v16 = vpop.permute.xlu2 %1266 }
 0x57c   : > { %1347 = vrot.lane.b32.xlu2 %v1346_v43, %s2182_s29  ;;  %1351 = vst [vmem:[#allocation1] ss:$2 sm:$0xff] %v1301_v35  ;;  %v1310_v23 = vmul.f32 %v1308_v45, %v1304_v46  ;;  %v1269_v21 = vmul.f32 %v1267_v16, %v2304_v1  ;;  %v1057_v35 = vsel %vm1056_vm1, %v2637_v7, -inf  ;;  %v1078_v46 = vadd.f32 %v1077_v11, %v1076_v37 }
 0x57d   : > { %v1058_v45 = vrot.slane %v1057_v35, 4 }
 0x580   : > { %v1252_v9 = vpop.permute.xlu0 %1251 }
 0x581   : > { %v1313_v47 = vpop.permute.xlu1 %1312  ;;  %v1254_v12 = vmul.f32 %v1252_v9, %v2304_v1  ;;  %v1103_v9 = vstv %s1860_s20  ;;  %s2131_s20 = scalar_lea.hbm %s2959_s7, 32 }
 0x582   : > { %v1319_v51 = vmul.f32 %v1317_v49, %v1313_v47  ;;  %v1079_v49 = vrot.slane %v1078_v46, 2 }
 0x583   : > { %v1352_v44 = vld.sshfl [vmem:[#allocation1] sm:$0xff pattern:$0x75316420] }
 0x584   : > { %1353 = vrot.lane.b32.xlu1 %v1352_v44, %s2185_s13  ;;  %1357 = vst [vmem:[#allocation1] ss:$2 sm:$0xff] %v1310_v23 }
 0x58a   : > { %v1322_v52 = vpop.permute.xlu1 %1321 }
 0x58b   : > { %v1358_v53 = vld.sshfl [vmem:[#allocation1] sm:$0xff pattern:$0x75316420]  ;;  %v1328_v61 = vmul.f32 %v1326_v55, %v1322_v52  ;;  %v1080_v55 = vadd.f32 %v1079_v49, %v1078_v46 }
 0x58c   : > { %1359 = vrot.lane.b32.xlu0 %v1358_v53, %s2180_s22  ;;  %1363 = vst [vmem:[#allocation1] ss:$2 sm:$0xff] %v1319_v51 }
 0x58d   : > { %v1081_v59 = vrot.slane %v1080_v55, 1 }
 0x58f   : > { %v1082_v62 = vadd.f32 %v1081_v59, %v1080_v55 }
 0x593   : > { %v1247_v63 = vpop.permute.xlu1 %1246  ;;  %v1364_v4 = vld.sshfl [vmem:[#allocation1] sm:$0xff pattern:$0x75316420] }
 0x594   : > { %v1249_v3 = vmul.f32 %v1247_v63, %v2304_v1  ;;  %1365 = vrot.lane.b32.xlu2 %v1364_v4, %s2971_s9  ;;  %1369 = vst [vmem:[#allocation1] ss:$2 sm:$0xff] %v1328_v61  ;;  %v1090_v4 = vmul.f32 0.25, %v1082_v62  ;;  %s2913_s9 = scalar_lea.vmem [#allocation5], %s1736_s21 }
 0x595   : > { %s1656_s22 = sshll.u32 %s2913_s9, 4  ;;  %s1657_s22 = int_to_ptr.vmem [resolvable:$true] %s1656_s22 }
 0x596   : > { %v1382_v56 = vsel %vm1208_vm3, %v1381_v10, %v1249_v3  ;;  %v1098_v3 = vmul.f32 %v1097_v39, %v1090_v4 }
 0x597   : > { %v1383_v17 = vsel %vm638_vm12, %v1382_v56, %v1254_v12  ;;  %v1105_v12 = vadd.f32 %v1103_v9, %v2657_v48 }
 0x598   : > { %v1384_v14 = vsel %vm1211_vm7, %v1383_v17, %v1259_v18 }
 0x59b   : > { %v1370_v26 = vld.sshfl [vmem:[#allocation1] sm:$0xff pattern:$0x75316420] }
 0x59c   : > { %v1262_v19 = vpop.permute.xlu1 %1261  ;;  %1371 = vrot.lane.b32.xlu1 %v1370_v26, %s2181_s23  ;;  %1375 = vst [vmem:[#allocation1] ss:$2 sm:$0xff] %v1337_v15  ;;  %1400 = vperm.xlu2 %2037, %v1397_v34   ;;  %v1862_v15 = vmul.f32 -1.442695, %v1105_v12 }
 0x59d   : > { %v1264_v20 = vmul.f32 %v1262_v19, %v2304_v1 }
 0x59f   : > { %v1385_v22 = vsel %vm640_vm13, %v1384_v14, %v1264_v20 }
 0x5a0   : > { %v1386_v25 = vsel %vm1214_vm5, %v1385_v22, %v1269_v21 }
 0x5a1   : > { %v1394_v27 = vpack.c.bf16 %v1386_v25, %v1386_v25 }
 0x5a3   : > { %v1376_v28 = vld.sshfl [vmem:[#allocation1] sm:$0xff pattern:$0x75316420]  ;;  %v1479_v29 = vsel %vm629_vm0, %v1394_v27, 0 }
 0x5a4   : > { %1377 = vrot.lane.b32.xlu0 %v1376_v28, %s2972_s14  ;;  %1556 = vst [vmem:[#allocation1] ss:$4 sm:$0xff] %v2301_v0  ;;  %1491 = vmatpush.bf16.msrb.mxu0 %v1479_v29  ;;  %v1550_v0 = vld [vmem:[%s2956_s4] sm:$0xf]  ;;  %s1911_s14 = sshll.u32 %s2265_s28, 4  ;;  %s1643_s28 = scalar_lea.sflag [#allocation3], %s283_s8 }
 0x5a5   : > { %1552 = vperm.xlu1 %2038, %v1397_v34   ;;  %v1272_v36 = vpop.permute.xlu1 %1271  ;;  %s1654_s17 = scalar_lea.hbm %s2959_s7, %s1911_s14 }
 0x5a6   : > { %v1274_v38 = vmul.f32 %v1272_v36, %v2307_v2  ;;  %v1059_v2 = vmax.f32 %v1057_v35, %v1058_v45  ;;  %s1658_s23 = sshll.u32 %s1654_s17, 4  ;;  %s1659_s23 = int_to_ptr.hbm [resolvable:$true] %s1658_s23 }
 0x5a7   : > { %1869 = vmatmul.msk.bf16.vlgmr.msrb.gmra.mxu0 %vm551_vm8, %v1396_v33  ;;  %s2125_s29 = sshra.s32 %s1659_s23, 4  ;;  %s2126_s29 = int_to_ptr.hbm [resolvable:$true] %s2125_s29 }
 0x5a8   : > { %v1060_v54 = vrot.slane %v1059_v2, 2  ;;  %s2127_s13 = scalar_lea.hbm %s2126_s29, 16  ;;  %p2132_p3 = scmp.lt.s32.totalorder %s2126_s29, %s2959_s7 }
 0x5a9   : > { %p2128_p0 = scmp.ne.s32.totalorder %s2126_s29, %s2127_s13  ;;  %p2133_p4 = scmp.lt.s32.totalorder %s2131_s20, %s2127_s13 }
 0x5aa   : > { %v1061_v58 = vmax.f32 %v1059_v2, %v1060_v54 }
 0x5ab   : > { %v1557_v30 = vld.sshfl [vmem:[#allocation1] sm:$0xff pattern:$0x73625140]  ;;  %v1558_v31 = vld.sshfl [vmem:[#allocation1 + $0x8] sm:$0xff pattern:$0x73625140]  ;;  %p2129_p1 = pnand %p2128_p0, %p2282_p5  ;;  %p2134_p7 = por %p2133_p4, %p2132_p3 }
 0x5ac   : > { %v1562_v32 = vsel %vm629_vm0, %v1557_v30, 0  ;;  %v1564_v1 = vsel %vm629_vm0, %v1558_v31, 0  ;;  %v1062_v61 = vrot.slane %v1061_v58, 1 }
 0x5ad   : > { %1573 = vmatpush.bf16.msra.mxu1 %v1562_v32  ;;  %1586 = vmatpush.bf16.msra.mxu3 %v1564_v1  ;;  %p2130_p2 = pneg %p2129_p1 }
 0x5ae   : > { %v1063_v63 = vmax.f32 %v1061_v58, %v1062_v61 }
 0x5af   : > { %p2135_p8 = pnand %p2134_p7, %p2130_p2 }
 0x5b0   : > { %1874 = vmatmul.msk.bf16.vlgmr.msra.gmra.mxu3 %vm551_vm8, %v1550_v0  ;;  %1873 = vmatmul.msk.bf16.vlgmr.msra.gmra.mxu1 %vm551_vm8, %v1550_v0  ;;  %v1094_v5 = vmul.f32 %v1093_v24, %v1063_v63 }
 0x5b2   : > { %v1100_v8 = vadd.f32 %v1098_v3, %v1094_v5 }
 0x5b4   : > { %v1104_v10 = vadd.f32 %v1103_v9, %v1100_v8 }
 0x5b6   : > { %v1861_v56 = vmul.f32 -1.442695, %v1104_v10 }
 0x5b8   : > { %2056 = vpow2.f32 %v1861_v56 }
 0x5b9   : > { %2058 = vpow2.f32 %v1862_v15 }
 0x5be   : > { %v2057_v17 = vpop.eup %2056 }
 0x5bf   : > { %v1112_v26 = vadd.f32 1.0, %v2057_v17  ;;  %v2059_v18 = vpop.eup %2058 }
 0x5c0   : > { %v1113_v20 = vadd.f32 1.0, %v2059_v18 }
 0x5c1   : > { %2060 = vrcp.f32 %v1112_v26  ;;  %v1125_v14 = vand.u32 2147483648, %v1112_v26  ;;  %v1123_v25 = vand.u32 2147483647, %v1112_v26 }
 0x5c2   : > { %2062 = vrcp.f32 %v1113_v20  ;;  %v1140_v36 = vand.u32 2147483648, %v1113_v20 }
 0x5c3   : > { %v1126_v30 = vor.u32 1.1754944e-38, %v1125_v14 }
 0x5c7   : > { %v2061_v24 = vpop.eup %2060 }
 0x5c8   : > { %v1115_v39 = vmul.f32 %v2061_v24, %v1112_v26  ;;  %v2063_v27 = vpop.eup %2062 }
 0x5c9   : > { %v1130_v29 = vmul.f32 %v2063_v27, %v1113_v20 }
 0x5ca   : > { %v1116_v22 = vsub.f32 1.0, %v1115_v39 }
 0x5cb   : > { %v1131_v32 = vsub.f32 1.0, %v1130_v29 }
 0x5cc   : > { %v1117_v28 = vmul.f32 %v2061_v24, %v1116_v22 }
 0x5cd   : > { %v1132_v0 = vmul.f32 %v2063_v27, %v1131_v32 }
 0x5ce   : > { %v1118_v31 = vadd.f32 %v2061_v24, %v1117_v28 }
 0x5cf   : > { %v1133_v37 = vadd.f32 %v2063_v27, %v1132_v0 }
 0x5d6   : > { %v1348_v13 = vpop.permute.xlu2 %1347 }
 0x5df   : > { %v1421_v16 = vpop.f32.mrf.mxu1 }
 0x5e5   : > { %v1342_v6 = vpop.permute.xlu0 %1341  ;;  %v1434_v19 = vpop.f32.mrf.mxu3 }
 0x5e6   : > { %v1387_v40 = vsel %vm598_vm6, %v1274_v38, %v1342_v6  ;;  %vm1120_vm6 = vweird.f32 %v2061_v24 }
 0x5e7   : > { %v1388_v42 = vsel %vm636_vm9, %v1387_v40, %v1348_v13  ;;  %v1423_v21 = vpop.f32.mrf.mxu1  ;;  %vm1124_vm9 = vcmp.eq.f32.partialorder %v1123_v25, 8.507059e+37  ;;  %v1141_v13 = vor.u32 1.1754944e-38, %v1140_v36 }
 0x5ed   : > { %v1436_v48 = vpop.f32.mrf.mxu3 }
 0x5ee   : > { %v1366_v44 = vpop.permute.xlu2 %1365 }
 0x5f6   : > { %v1354_v41 = vpop.permute.xlu1 %1353  ;;  %v2762_v45 = vpop.permute.xlu2 %1400 }
 0x5f7   : > { %v1389_v47 = vsel %vm1208_vm3, %v1388_v42, %v1354_v41  ;;  %v1138_v41 = vand.u32 2147483647, %v1113_v20  ;;  %v2770_v2 = vadd.f32 %v1434_v19, %v2762_v45 }
 0x5f9   : > { %vm1139_vm15 = vcmp.eq.f32.partialorder %v1138_v41, 8.507059e+37 }
 0x5fe   : > { %v1360_v43 = vpop.permute.xlu0 %1359 }
 0x5ff   : > { %v1390_v23 = vsel %vm638_vm12, %v1389_v47, %v1360_v43  ;;  %vm1134_vm12 = vweird.f32 %v1113_v20 }
 0x600   : > { %v1391_v50 = vsel %vm1211_vm7, %v1390_v23, %v1366_v44  ;;  %v2767_v44 = vadd.f32 %v1421_v16, %v2762_v45 }
 0x60e   : > { %v1372_v60 = vpop.permute.xlu1 %1371 }
 0x60f   : > { %v1392_v51 = vsel %vm640_vm13, %v1391_v50, %v1372_v60  ;;  %vm1135_vm13 = vweird.f32 %v2063_v27 }
 0x610   : > { %vm1136_vm14 = vmor %vm1134_vm12, %vm1135_vm13 }
 0x611   : > { %v1137_v43 = vsel %vm1136_vm14, %v2063_v27, %v1133_v37 }
 0x612   : > { %v1142_v47 = vsel %vm1139_vm15, %v1141_v13, %v1137_v43 }
 0x613   : > { %v1145_v60 = vmul.f32 %v1142_v47, %v1105_v12 }
 0x616   : > { %v1378_v52 = vpop.permute.xlu0 %1377 }
 0x617   : > { %v1393_v7 = vsel %vm1214_vm5, %v1392_v51, %v1378_v52  ;;  %v1553_v38 = vpop.permute.xlu1 %1552  ;;  %v1864_v51 = vmul.f32 -1.442695, %v1145_v60  ;;  %v1867_v52 = vmul.f32 -1.442695, %v2767_v44 }
 0x618   : > { %v1395_v53 = vpack.c.bf16 %v1393_v7, %v1393_v7  ;;  %v1868_v7 = vmul.f32 -1.442695, %v2770_v2 }
 0x61a   : > { %v1482_v57 = vsel %vm629_vm0, %v1395_v53, 0 }
 0x61b   : > { %1504 = vmatpush.bf16.msrb.mxu2 %v1482_v57 }
 0x61e   : > { %1870 = vmatmul.msk.bf16.vlgmr.msrb.gmra.mxu2 %vm551_vm8, %v1396_v33  ;;  %vm1119_vm8 = vweird.f32 %v1112_v26 }
 0x61f   : > { %vm1121_vm0 = vmor %vm1119_vm8, %vm1120_vm6 }
 0x620   : > { %v1122_v33 = vsel %vm1121_vm0, %v2061_v24, %v1118_v31 }
 0x621   : > { %v1127_v34 = vsel %vm1124_vm9, %v1126_v30, %v1122_v33 }
 0x622   : > { %v1144_v6 = vmul.f32 %v1127_v34, %v1104_v10 }
 0x624   : > { %v1863_v40 = vmul.f32 -1.442695, %v1144_v6  ;;  %v1493_v49 = vpop.f32.mrf.mxu0 }
 0x625   : > { %v2775_v55 = vadd.f32 %v1493_v49, %v2762_v45 }
 0x626   : > { %2064 = vpow2.f32 %v1863_v40 }
 0x627   : > { %v1871_v4 = vmul.f32 -1.442695, %v2775_v55 }
 0x62c   : > { %v2065_v54 = vpop.eup %2064  ;;  %v1495_v61 = vpop.f32.mrf.mxu0 }
 0x62d   : > { %v1575_v1 = vpop.f32.mrf.mxu1  ;;  %v2777_v57 = vadd.f32 1.0, %v2065_v54 }
 0x62e   : > { %v2758_v35 = vadd.f32 %v1575_v1, %v1553_v38 }
 0x62f   : > { %v1165_v3 = vand.u32 2147483648, %v2777_v57  ;;  %vm1159_vm1 = vweird.f32 %v2777_v57  ;;  %v1163_v17 = vand.u32 2147483647, %v2777_v57 }
 0x630   : > { %v1875_v46 = vmul.f32 -1.442695, %v2758_v35 }
 0x631   : > { %v2793_v26 = vor.u32 1.1754944e-38, %v1165_v3  ;;  %vm2824_vm0 = vcmp.eq.f32.partialorder %v1163_v17, 8.507059e+37 }
 0x632   : > { %2066 = vpow2.f32 %v1875_v46 }
 0x633   : > { %v1588_v11 = vpop.f32.mrf.mxu3 }
 0x634   : > { %v2760_v42 = vadd.f32 %v1588_v11, %v1553_v38 }
 0x635   : > { %v1577_v50 = vpop.f32.mrf.mxu1 }
 0x636   : > { %v1876_v23 = vmul.f32 -1.442695, %v2760_v42 }
 0x638   : > { %2068 = vpow2.f32 %v1876_v23  ;;  %v2067_v58 = vpop.eup %2066 }
 0x639   : > { %2070 = vpow2.f32 %v1864_v51  ;;  %v1598_v62 = vadd.f32 1.0, %v2067_v58 }
 0x63a   : > { %2072 = vpow2.f32 %v1867_v52 }
 0x63b   : > { %v1590_v53 = vpop.f32.mrf.mxu3  ;;  %2074 = vpow2.f32 %v1868_v7  ;;  %v1609_v56 = vand.u32 2147483647, %v1598_v62  ;;  %v1611_v12 = vand.u32 2147483648, %v1598_v62  ;;  %vm1605_vm3 = vweird.f32 %v1598_v62 }
 0x63c   : > { %2076 = vrcp.f32 %v2777_v57 }
 0x63d   : > { %2078 = vrcp.f32 %v1598_v62  ;;  %vm2806_vm7 = vcmp.eq.f32.partialorder %v1609_v56, 8.507059e+37  ;;  %v1612_v27 = vor.u32 1.1754944e-38, %v1611_v12 }
 0x63e   : > { %v2069_v59 = vpop.eup %2068 }
 0x63f   : > { %v2780_v63 = vadd.f32 1.0, %v2069_v59  ;;  %v2071_v5 = vpop.eup %2070 }
 0x640   : > { %v2073_v8 = vpop.eup %2072  ;;  %v2784_v9 = vadd.f32 1.0, %v2071_v5 }
 0x641   : > { %2080 = vrcp.f32 %v2780_v63  ;;  %v2075_v10 = vpop.eup %2074  ;;  %v2787_v15 = vadd.f32 1.0, %v2073_v8  ;;  %v1624_v18 = vand.u32 2147483647, %v2780_v63  ;;  %v1626_v24 = vand.u32 2147483648, %v2780_v63 }
 0x642   : > { %2082 = vpow2.f32 %v1871_v4  ;;  %v2789_v16 = vpop.eup %2076  ;;  %v1178_v20 = vand.u32 2147483647, %v2784_v9  ;;  %v1180_v21 = vand.u32 2147483648, %v2784_v9  ;;  %vm1620_vm4 = vweird.f32 %v2780_v63 }
 0x643   : > { %2084 = vrcp.f32 %v2784_v9  ;;  %v1155_v19 = vmul.f32 %v2789_v16, %v2777_v57  ;;  %v2803_v39 = vadd.f32 1.0, %v2075_v10  ;;  %v2079_v14 = vpop.eup %2078  ;;  %vm1174_vm10 = vweird.f32 %v2784_v9 }
 0x644   : > { %2086 = vrcp.f32 %v2787_v15  ;;  %vm1160_vm11 = vweird.f32 %v2789_v16  ;;  %v1601_v28 = vmul.f32 %v2079_v14, %v1598_v62  ;;  %vm2812_vm2 = vcmp.eq.f32.partialorder %v1624_v18, 8.507059e+37 }
 0x645   : > { %v1156_v22 = vsub.f32 1.0, %v1155_v19  ;;  %2088 = vrcp.f32 %v2803_v39  ;;  %vm2817_vm5 = vcmp.eq.f32.partialorder %v1178_v20, 8.507059e+37  ;;  %v1181_v32 = vor.u32 1.1754944e-38, %v1180_v21 }
 0x646   : > { %v1627_v33 = vor.u32 1.1754944e-38, %v1626_v24  ;;  %v1602_v36 = vsub.f32 1.0, %v1601_v28  ;;  %vm1606_vm8 = vweird.f32 %v2079_v14  ;;  %vm1451_vm6 = vweird.f32 %v2787_v15 }
 0x647   : > { %v2081_v48 = vpop.eup %2080  ;;  %v1157_v34 = vmul.f32 %v2789_v16, %v1156_v22  ;;  %v1455_v41 = vand.u32 2147483647, %v2787_v15  ;;  %v1457_v40 = vand.u32 2147483648, %v2787_v15  ;;  %vm1466_vm12 = vweird.f32 %v2803_v39  ;;  %vm2833_vm13 = vmor %vm1605_vm3, %vm1606_vm8 }
 0x648   : > { %v2083_v30 = vpop.eup %2082  ;;  %v1616_v1 = vmul.f32 %v2081_v48, %v2780_v63  ;;  %vm1621_vm9 = vweird.f32 %v2081_v48  ;;  %v1603_v11 = vmul.f32 %v2079_v14, %v1602_v36  ;;  %vm2850_vm8 = vmor %vm1159_vm1, %vm1160_vm11  ;;  %v1470_v63 = vand.u32 2147483647, %v2803_v39 }
 0x649   : > { %v2085_v0 = vpop.eup %2084  ;;  %v1516_v43 = vadd.f32 1.0, %v2083_v30  ;;  %v1158_v50 = vadd.f32 %v2789_v16, %v1157_v34  ;;  %vm2842_vm15 = vmor %vm1620_vm4, %vm1621_vm9  ;;  %vm2864_vm9 = vcmp.eq.f32.partialorder %v1455_v41, 8.507059e+37  ;;  %v1472_v4 = vand.u32 2147483648, %v2803_v39 }
 0x64a   : > { %v1170_v37 = vmul.f32 %v2085_v0, %v2784_v9  ;;  %v1617_v38 = vsub.f32 1.0, %v1616_v1  ;;  %v2087_v13 = vpop.eup %2086  ;;  %vm1175_vm14 = vweird.f32 %v2085_v0  ;;  %v1604_v51 = vadd.f32 %v2079_v14, %v1603_v11 }
 0x64b   : > { %v1447_v60 = vmul.f32 %v2087_v13, %v2787_v15  ;;  %v2089_v49 = vpop.eup %2088  ;;  %vm1452_vm3 = vweird.f32 %v2087_v13  ;;  %2090 = vrcp.f32 %v1516_v43  ;;  %vm2860_vm4 = vmor %vm1174_vm10, %vm1175_vm14  ;;  %v1458_v10 = vor.u32 1.1754944e-38, %v1457_v40 }
 0x64c   : > { %v1171_v47 = vsub.f32 1.0, %v1170_v37  ;;  %v1618_v23 = vmul.f32 %v2081_v48, %v1617_v38  ;;  %v1462_v59 = vmul.f32 %v2089_v49, %v2803_v39  ;;  %v1608_v61 = vsel %vm2833_vm13, %v2079_v14, %v1604_v51  ;;  %vm2879_vm1 = vmor %vm1451_vm6, %vm1452_vm3 }
 0x64d   : > { %v1448_v58 = vsub.f32 1.0, %v1447_v60  ;;  %v1613_v9 = vsel %vm2806_vm7, %v1612_v27, %v1608_v61  ;;  %vm1467_vm10 = vweird.f32 %v2089_v49  ;;  %v1162_v18 = vsel %vm2850_vm8, %v2789_v16, %v1158_v50 }
 0x64e   : > { %v1172_v53 = vmul.f32 %v2085_v0, %v1171_v47  ;;  %v1619_v54 = vadd.f32 %v2081_v48, %v1618_v23  ;;  %v1463_v17 = vsub.f32 1.0, %v1462_v59  ;;  %vm2891_vm7 = vcmp.eq.f32.partialorder %v1470_v63, 8.507059e+37  ;;  %vm1468_vm11 = vmor %vm1466_vm12, %vm1467_vm10 }
 0x64f   : > { %v1449_v8 = vmul.f32 %v2087_v13, %v1448_v58  ;;  %v1473_v25 = vor.u32 1.1754944e-38, %v1472_v4  ;;  %v1630_v27 = vmul.f32 %v1613_v9, %v2758_v35  ;;  %v1167_v28 = vsel %vm2824_vm0, %v2793_v26, %v1162_v18 }
 0x650   : > { %v1173_v5 = vadd.f32 %v2085_v0, %v1172_v53  ;;  %v1623_v3 = vsel %vm2842_vm15, %v2081_v48, %v1619_v54  ;;  %v1464_v14 = vmul.f32 %v2089_v49, %v1463_v17  ;;  %v1529_v31 = vand.u32 2147483648, %v1516_v43 }
 0x651   : > { %v1628_v56 = vsel %vm2812_vm2, %v1627_v33, %v1623_v3  ;;  %v1450_v21 = vadd.f32 %v2087_v13, %v1449_v8  ;;  %v2091_v24 = vpop.eup %2090  ;;  %vm1523_vm2 = vweird.f32 %v1516_v43  ;;  %v1527_v35 = vand.u32 2147483647, %v1516_v43 }
 0x652   : > { %v1177_v19 = vsel %vm2860_vm4, %v2085_v0, %v1173_v5  ;;  %v1631_v20 = vmul.f32 %v1628_v56, %v2760_v42  ;;  %v1519_v42 = vmul.f32 %v2091_v24, %v1516_v43  ;;  %v1465_v30 = vadd.f32 %v2089_v49, %v1464_v14 }
 0x653   : > { %v1182_v15 = vsel %vm2817_vm5, %v1181_v32, %v1177_v19  ;;  %v1454_v16 = vsel %vm2879_vm1, %v2087_v13, %v1450_v21  ;;  %vm1524_vm5 = vweird.f32 %v2091_v24  ;;  %v1632_v33 = vmul.f32 %v1630_v27, %v1167_v28 }
 0x654   : > { %v1633_v48 = vmul.f32 %v1631_v20, %v1182_v15  ;;  %v1459_v29 = vsel %vm2864_vm9, %v1458_v10, %v1454_v16  ;;  %v1520_v32 = vsub.f32 1.0, %v1519_v42  ;;  %v1469_v1 = vsel %vm1468_vm11, %v2089_v49, %v1465_v30  ;;  %vm1525_vm6 = vmor %vm1523_vm2, %vm1524_vm5 }
 0x655   : > { %v1474_v39 = vsel %vm2891_vm7, %v1473_v25, %v1469_v1  ;;  %v1476_v0 = vmul.f32 %v1459_v29, %v2767_v44  ;;  %v1530_v36 = vor.u32 1.1754944e-38, %v1529_v31  ;;  %vm1528_vm0 = vcmp.eq.f32.partialorder %v1527_v35, 8.507059e+37 }
 0x656   : > { %v1521_v34 = vmul.f32 %v2091_v24, %v1520_v32  ;;  %v1477_v26 = vmul.f32 %v1474_v39, %v2770_v2 }
 0x657   : > { %v1634_v41 = vadd.f32 %v1632_v33, %v1476_v0 }
 0x658   : > { %v1522_v6 = vadd.f32 %v2091_v24, %v1521_v34  ;;  %v1635_v37 = vadd.f32 %v1633_v48, %v1477_v26 }
 0x65a   : > { %v1526_v38 = vsel %vm1525_vm6, %v2091_v24, %v1522_v6 }
 0x65b   : > { %v1531_v13 = vsel %vm1528_vm0, %v1530_v36, %v1526_v38 }
 0x65c   : > { %v1548_v11 = vmul.f32 %v1531_v13, %v2775_v55 }
 0x65e   : > { %v1636_v40 = vadd.f32 %v1634_v41, %v1548_v11 }
 0x660   : > { %v1638_v43 = vmul.f32 0.33333334, %v1636_v40 }
 0x662   : > { %1640 = vst [vmem:[%s2913_s9] sm:$0xff] %v1638_v43 }
 0x6a1   : > { %v1506_v44 = vpop.f32.mrf.mxu2 }
 0x6a2   : > { %v1507_v2 = vadd.f32 %v1506_v44, %v2762_v45 }
 0x6a4   : > { %v1872_v46 = vmul.f32 -1.442695, %v1507_v2 }
 0x6a6   : > { %2092 = vpow2.f32 %v1872_v46 }
 0x6a9   : > { %v1508_v47 = vpop.f32.mrf.mxu2 }
 0x6ac   : > { %v2093_v23 = vpop.eup %2092 }
 0x6ad   : > { %v1517_v60 = vadd.f32 1.0, %v2093_v23 }
 0x6af   : > { %2094 = vrcp.f32 %v1517_v60  ;;  %v1544_v51 = vand.u32 2147483648, %v1517_v60  ;;  %v1542_v7 = vand.u32 2147483647, %v1517_v60  ;;  %vm1538_vm13 = vweird.f32 %v1517_v60 }
 0x6b1   : > { %v1545_v45 = vor.u32 1.1754944e-38, %v1544_v51  ;;  %vm1543_vm15 = vcmp.eq.f32.partialorder %v1542_v7, 8.507059e+37 }
 0x6b5   : > { %v2095_v49 = vpop.eup %2094 }
 0x6b6   : > { %v1534_v55 = vmul.f32 %v2095_v49, %v1517_v60  ;;  %vm1539_vm12 = vweird.f32 %v2095_v49 }
 0x6b7   : > { %vm1540_vm14 = vmor %vm1538_vm13, %vm1539_vm12 }
 0x6b8   : > { %v1535_v50 = vsub.f32 1.0, %v1534_v55 }
 0x6ba   : > { %v1536_v52 = vmul.f32 %v2095_v49, %v1535_v50 }
 0x6bc   : > { %v1537_v53 = vadd.f32 %v2095_v49, %v1536_v52 }
 0x6be   : > { %v1541_v54 = vsel %vm1540_vm14, %v2095_v49, %v1537_v53 }
 0x6bf   : > { %v1546_v58 = vsel %vm1543_vm15, %v1545_v45, %v1541_v54 }
 0x6c0   : > { %v1549_v59 = vmul.f32 %v1546_v58, %v1507_v2 }
 0x6c2   : > { %v1637_v61 = vadd.f32 %v1635_v37, %v1549_v59 }
 0x6c4   : > { %v1639_v62 = vmul.f32 0.33333334, %v1637_v61 }
 0x6c6   : > { %1641 = vst [vmem:[%s2913_s9 + $0x8] sm:$0xff] %v1639_v62 }
 0x6c7   : > { %2138 = shalt.err (!%p2135_p8)
}
 0x6c8   : > { %1916 = dma.vmem_to_hbm [thread:$0]  (%p2282_p5), %s1657_s22, 256, %s1659_s23, %s1643_s28  }
 0x6c9 PF: > { %p1928_p9 = scmp.ge.s32.totalorder %s2177_s27, 2  ;;  %s1670_s8 = sand.u32 1, %s2165_s24  }
 0x6ca   : > { %s1671_s9 = scalar_lea.sflag [#allocation3], %s1670_s8 }
 0x6cb   : > { %p1923_p10 = pnand %p1928_p9, %p2286_p6 }
 0x6cd   : > { %p1924_p11 = pneg %p1923_p10 }
 0x6cf   : > { %2160 = dma.done.wait (%p1924_p11), %s1671_s9, 256  }
 0x6d0   : > { %2162 = vsyncadd (%p1924_p11), %s1671_s9, 4294967040  ;;  %p18_p12 = scmp.ge.s32.totalorder %s2269_s30, 4   ;;  %s2995_s24 = smov %s2169_s25 }
 0x6d1   : > { %s2996_s25 = smov %s2173_s26  ;;  %s2997_s26 = smov %s2280_s10 }
 0x6d2   : > { %s2998_s27 = smov %s2269_s30  ;;  %20 = sbr.rel (!%p18_p12) target bundleno = 4 (0x4), region = 88 }
 0x6d7   :  { %1677 = vsyncpa [#allocation3], 1 }
 0x6d8   :  { %1679 = vsyncpa [#allocation3 + $0x1], 1 }
 0x6d9   :  { %1680 = vsyncpa [#allocation4], 1 }
 0x6da   :  { %1682 = vsyncpa [#allocation4 + $0x1], 1 }

</bundles_post_ra>
